<compile_context>
chip_gen: v7x
topology: tpu7x:2x2x1
jax: 0.10.0
libtpu: 0.0.40
codegen_flags: <defaults>
</compile_context>

<pallas_src>
import functools
import math

import jax
import jax.numpy as jnp
import numpy as np
from jax import lax
from jax.experimental import pallas as pl
from jax.experimental.pallas import tpu as pltpu

# ---- configuration fixed by the module definition ----
EMB_SIZE = 256            # self.emb_size = 256
EMA_FACTOR = 8            # EMA(channels=256, factor=8)
GROUPS = EMA_FACTOR
CG = EMB_SIZE // GROUPS   # 32 channels per EMA group
GN_EPS = 1e-5             # nn.GroupNorm default eps

# MXU operand dtype: bf16 operands, f32 accumulation (preferred_element_type).
MXU_DTYPE = jnp.bfloat16


def _dot(a, b):
    """MXU matmul with f32 accumulation; operands are already in MXU_DTYPE."""
    return jnp.dot(a, b, preferred_element_type=jnp.float32)


def _group_rotate_reduce(x, lane, op):
    """Reduce within each contiguous CG-lane group; result broadcast to every lane.

    log2(CG) steps of two XLU lane-rolls + a select + the combine op.  Keeps the tiny
    softmax statistics in f32 on the VPU/XLU instead of burning an M=2 MXU pass, and
    gives exact per-group max / per-group sum.
    """
    n = x.shape[-1]
    s = 1
    while s < CG:
        r_in = pltpu.roll(x, n - s, axis=1)      # lane p <- p + s       (same group)
        r_wrap = pltpu.roll(x, CG - s, axis=1)   # lane p <- p + s - CG  (wrap in group)
        x = op(x, jnp.where(lane < CG - s, r_in, r_wrap))
        s *= 2
    return x


# --------------------------------------------------------------- fused EMA + linear
def ema_linear_kernel(y_ref, w1_ref, bias_ref, w3_ref, gs_ref, wl_ref, bl_ref, o_ref):
    """One batch element.  y_ref is (H, 256) channel-last (all 8 EMA groups)."""
    y = y_ref[...].astype(jnp.float32)                  # (H, C) activations in f32
    H = y.shape[0]
    y_mx = y.astype(MXU_DTYPE)                          # single cast, reused by 2 matmuls

    biases = bias_ref[...]                              # (4, C) f32
    b1, gnw, gnb, b3 = (biases[i:i + 1, :] for i in range(4))

    # --- conv1x1 gate branch: one block-diagonal lane-dense matmul ---
    hw_h = _dot(y_mx, w1_ref[...]) + b1                 # (H, C) per-position gate logits
    hw_w = jnp.mean(hw_h, axis=0, keepdims=True)        # == conv1x1(mean_H(y)) by linearity
    g1 = y * jax.nn.sigmoid(hw_h) * jax.nn.sigmoid(hw_w)

    # --- GroupNorm(CG groups, CG channels) == per-channel normalization over H ---
    mu = jnp.mean(g1, axis=0, keepdims=True)
    var = jnp.mean(jnp.square(g1 - mu), axis=0, keepdims=True)
    x1 = (g1 - mu) * lax.rsqrt(var + GN_EPS) * gnw + gnb

    # --- conv3x3 (W==1, padding 1) == 3-tap conv along H: three accumulating matmuls,
    #     shifted rows via XLU roll, wrapped boundary row zeroed with an (H,1) mask ---
    ridx = lax.broadcasted_iota(jnp.int32, (H, 1), 0)
    tap_m1 = (pltpu.roll(y, 1, axis=0) * (ridx > 0).astype(jnp.float32)).astype(MXU_DTYPE)
    tap_p1 = (pltpu.roll(y, H - 1, axis=0) * (ridx < H - 1).astype(jnp.float32)).astype(MXU_DTYPE)
    x2 = (_dot(tap_m1, w3_ref[0]) + _dot(y_mx, w3_ref[1])
          + _dot(tap_p1, w3_ref[2]) + b3)               # (H, C)

    # --- adaptive avg pool -> per-group softmax over channels (all f32, MXU-free) ---
    m = jnp.concatenate([jnp.mean(x1, axis=0, keepdims=True),
                         jnp.mean(x2, axis=0, keepdims=True)], axis=0)    # (2, C)
    lane = lax.broadcasted_iota(jnp.int32, m.shape, 1) & (CG - 1)         # in-group lane id
    pg_max = _group_rotate_reduce(m, lane, jnp.maximum)                   # per-group max
    e = jnp.exp(m - pg_max)
    pg_sum = _group_rotate_reduce(e, lane, jnp.add)                       # per-group sum (>= 1)
    a = e / pg_sum                                                        # per-group softmax
    a1, a2 = a[0:1, :], a[1:2, :]

    # weights = a1 @ x2 + a2 @ x1 per group, broadcast back onto the group's 32 lanes.
    # The two group-broadcast matmuls are merged into one by linearity.
    wmap = _dot((x2 * a1 + x1 * a2).astype(MXU_DTYPE), gs_ref[...])       # (H, C)
    emb2 = y * jax.nn.sigmoid(wmap)

    # --- fused in_linear epilogue: (H, C) @ (C, hidden_pad) + bias, lane-dense store ---
    o_ref[...] = (_dot(emb2.astype(MXU_DTYPE), wl_ref[...]) + bl_ref[...]).astype(o_ref.dtype)


def ema_linear_forward(emb, w1, biases, w3, gs, wl, bl):
    bs, H, C = emb.shape
    hidden_pad = wl.shape[1]

    flops = bs * 2 * H * C * (5 * C + hidden_pad)
    transcendentals = bs * (2 * H * C + 6 * C)
    bytes_accessed = int(emb.size * emb.dtype.itemsize
                         + bs * H * hidden_pad * 4
                         + (w1.size + w3.size + gs.size + wl.size) * np.dtype(w1.dtype).itemsize
                         + (biases.size + bl.size) * 4)
    cost = pl.CostEstimate(flops=int(flops), transcendentals=int(transcendentals),
                           bytes_accessed=bytes_accessed)

    return pl.pallas_call(
        ema_linear_kernel,
        out_shape=jax.ShapeDtypeStruct((bs, H, hidden_pad), emb.dtype),
        grid=(bs,),
        in_specs=[
            pl.BlockSpec((None, H, C), lambda b: (b, 0, 0)),     # emb tile for batch b
            pl.BlockSpec((C, C), lambda b: (0, 0)),              # block-diag conv1x1 weight (bf16)
            pl.BlockSpec((4, C), lambda b: (0, 0)),              # packed [b1; gn_w; gn_b; b3] (f32)
            pl.BlockSpec((3, C, C), lambda b: (0, 0, 0)),        # 3-tap block-diag conv weight (bf16)
            pl.BlockSpec((C, C), lambda b: (0, 0)),              # same-group indicator (bf16)
            pl.BlockSpec((C, hidden_pad), lambda b: (0, 0)),     # in_linear weight^T, lane-padded (bf16)
            pl.BlockSpec((1, hidden_pad), lambda b: (0, 0)),     # in_linear bias, lane-padded (f32)
        ],
        out_specs=pl.BlockSpec((None, H, hidden_pad), lambda b: (b, 0, 0)),
        compiler_params=pltpu.CompilerParams(
            dimension_semantics=("parallel",),
            vmem_limit_bytes=32 * 1024 * 1024),
        cost_estimate=cost,
    )(emb, w1, biases, w3, gs, wl, bl)


# --------------------------------------------------------------------- parameters
def init_params(key, n_token, former_vocab, hidden):
    ks = jax.random.split(key, 8)
    p = {}
    p["word_emb"] = jax.random.normal(ks[0], (n_token, EMB_SIZE), jnp.float32) * 0.02
    p["former_word_emb"] = jax.random.normal(ks[1], (former_vocab, hidden), jnp.float32) * 0.02
    p["conv1_w"] = jax.random.normal(ks[2], (CG, CG, 1, 1), jnp.float32) / math.sqrt(CG)
    p["conv1_b"] = jax.random.normal(ks[3], (CG,), jnp.float32) * 0.01
    p["conv3_w"] = jax.random.normal(ks[4], (CG, CG, 3, 3), jnp.float32) / math.sqrt(CG * 9)
    p["conv3_b"] = jax.random.normal(ks[5], (CG,), jnp.float32) * 0.01
    p["gn_w"] = jnp.ones((CG,), jnp.float32)      # nn.GroupNorm default affine
    p["gn_b"] = jnp.zeros((CG,), jnp.float32)
    p["in_w"] = jax.random.normal(ks[6], (hidden, EMB_SIZE), jnp.float32) * 0.02
    p["in_b"] = jax.random.normal(ks[7], (hidden,), jnp.float32) * 0.01
    return p


def _block_diag_repeat(w):
    """(CG, CG) -> (256, 256) block-diagonal matrix with w on every diagonal block."""
    return jnp.kron(jnp.eye(GROUPS, dtype=w.dtype), w)


def _round_up(x, m):
    return (x + m - 1) // m * m


# ----------------------------------------------------------------- MidiFormer fwd
@functools.partial(jax.jit, static_argnames=("mode",))
def midiformer_forward(params, input_id, attn_mask, mode="mlm"):
    bs, slen = input_id.shape
    hidden = params["in_w"].shape[0]
    hidden_pad = _round_up(hidden, 128)          # lane-dense output stores (no vst.msk)

    mark = 0 if mode == "mlm" else 1
    special_ids = jnp.full((bs, 1), mark, jnp.int32)
    special_emb = jnp.take(params["former_word_emb"], special_ids, axis=0)   # (bs,1,hidden)

    # Embeddings: lut(x) * sqrt(d_model)   (gather stays in plain JAX glue)
    emb = jnp.take(params["word_emb"], input_id, axis=0) * math.sqrt(EMB_SIZE)  # (bs,slen,256)

    # Grouped conv weights -> lane-dense block-diagonal matrices, pre-cast to bf16
    # (tiny; constant-folded under jit).  Channel c belongs to EMA group c // CG.
    w1_bd = _block_diag_repeat(jnp.transpose(params["conv1_w"][:, :, 0, 0])).astype(MXU_DTYPE)
    w3t = jnp.transpose(params["conv3_w"][:, :, :, 1], (2, 1, 0))               # (3, CGi, CGo)
    w3_bd = jnp.stack([_block_diag_repeat(w3t[t]) for t in range(3)]).astype(MXU_DTYPE)  # (3,C,C)
    gs = jnp.kron(jnp.eye(GROUPS, dtype=jnp.float32),
                  jnp.ones((CG, CG), jnp.float32)).astype(MXU_DTYPE)            # (256,256)

    def tile_c(v):
        return jnp.tile(v, GROUPS)                                              # (256,)

    biases = jnp.stack([tile_c(params["conv1_b"]), tile_c(params["gn_w"]),
                        tile_c(params["gn_b"]), tile_c(params["conv3_b"])])     # (4, 256) f32

    wl = jnp.zeros((EMB_SIZE, hidden_pad), jnp.float32)
    wl = wl.at[:, :hidden].set(jnp.transpose(params["in_w"])).astype(MXU_DTYPE)
    bl = jnp.zeros((1, hidden_pad), jnp.float32).at[:, :hidden].set(params["in_b"][None, :])

    out = ema_linear_forward(emb, w1_bd, biases, w3_bd, gs, wl, bl)   # (bs, slen, hidden_pad)
    emb_linear = out[..., :hidden]

    emb_linear = jnp.concatenate([special_emb, emb_linear], axis=1)
    attn_mask = jnp.concatenate([jnp.ones((bs, 1), attn_mask.dtype), attn_mask], axis=1)

    # TODO(synk): FormerModel (self.former, a BERT-style encoder) is not defined in the
    # provided source; we return the (inputs_embeds, attention_mask) pair that would feed it.
    return emb_linear, attn_mask


# ------------------------------------------------------------- pure-JAX reference
def ema_ref(x, conv1_w, conv1_b, conv3_w, conv3_b, gn_w, gn_b, groups):
    b, cch, h, w = x.shape
    cg = cch // groups
    gx = x.reshape(b * groups, cg, h, w)
    x_h = jnp.mean(gx, axis=3, keepdims=True)
    x_w = jnp.transpose(jnp.mean(gx, axis=2, keepdims=True), (0, 1, 3, 2))
    cat = jnp.concatenate([x_h, x_w], axis=2)
    hw = jnp.einsum("oi,bipq->bopq", conv1_w[:, :, 0, 0], cat) + conv1_b[None, :, None, None]
    xh, xw = hw[:, :, :h], jnp.transpose(hw[:, :, h:], (0, 1, 3, 2))
    g1 = gx * jax.nn.sigmoid(xh) * jax.nn.sigmoid(xw)
    mu = jnp.mean(g1, axis=(2, 3), keepdims=True)
    var = jnp.mean((g1 - mu) ** 2, axis=(2, 3), keepdims=True)
    x1 = (g1 - mu) / jnp.sqrt(var + GN_EPS) * gn_w[None, :, None, None] + gn_b[None, :, None, None]
    x2 = lax.conv_general_dilated(gx, conv3_w, (1, 1), ((1, 1), (1, 1)),
                                  dimension_numbers=("NCHW", "OIHW", "NCHW"))
    x2 = x2 + conv3_b[None, :, None, None]
    a1 = jax.nn.softmax(jnp.mean(x1, axis=(2, 3)).reshape(b * groups, 1, cg), axis=-1)
    a2 = jax.nn.softmax(jnp.mean(x2, axis=(2, 3)).reshape(b * groups, 1, cg), axis=-1)
    x12 = x2.reshape(b * groups, cg, h * w)
    x22 = x1.reshape(b * groups, cg, h * w)
    weights = (jnp.matmul(a1, x12) + jnp.matmul(a2, x22)).reshape(b * groups, 1, h, w)
    return (gx * jax.nn.sigmoid(weights)).reshape(b, cch, h, w)


def ref_forward(params, input_id, attn_mask, mode="mlm"):
    bs, slen = input_id.shape
    mark = 0 if mode == "mlm" else 1
    special_emb = jnp.take(params["former_word_emb"], jnp.full((bs, 1), mark, jnp.int32), axis=0)
    emb = jnp.take(params["word_emb"], input_id, axis=0) * math.sqrt(EMB_SIZE)
    x = jnp.transpose(emb, (0, 2, 1))[..., None]          # NCHW (bs, 256, slen, 1)
    x = ema_ref(x, params["conv1_w"], params["conv1_b"], params["conv3_w"],
                params["conv3_b"], params["gn_w"], params["gn_b"], GROUPS)
    emb2 = jnp.transpose(x[..., 0], (0, 2, 1))
    lin = emb2 @ params["in_w"].T + params["in_b"]
    emb_linear = jnp.concatenate([special_emb, lin], axis=1)
    am = jnp.concatenate([jnp.ones((bs, 1), attn_mask.dtype), attn_mask], axis=1)
    return emb_linear, am


# ------------------------------------------------------------------------- main
if __name__ == "__main__":
    key = jax.random.PRNGKey(0)
    bs, slen, n_token, hidden, former_vocab = 2, 8, 16, 32, 4

    kp, ki = jax.random.split(key)
    params = init_params(kp, n_token, former_vocab, hidden)
    input_id = jax.random.randint(ki, (bs, slen), 0, n_token, dtype=jnp.int32)
    attn_mask = jnp.ones((bs, slen), jnp.float32)

    out_emb, out_mask = midiformer_forward(params, input_id, attn_mask, mode="mlm")
    jax.block_until_ready(out_emb)
    jax.block_until_ready(out_mask)

    ref_emb, ref_mask = ref_forward(params, input_id, attn_mask, mode="mlm")
    # bf16 MXU operands vs. the f32 reference: tolerance loosened accordingly
    # (VPU/EUP math and accumulation remain f32 inside the kernel).
    np.testing.assert_allclose(np.asarray(out_emb), np.asarray(ref_emb), rtol=3e-2, atol=5e-3)
    np.testing.assert_allclose(np.asarray(out_mask), np.asarray(ref_mask), rtol=1e-5, atol=1e-5)

    print("KERNEL_OK")
</pallas_src>

<mosaic_0001>
module attributes {stable_mosaic.version = 11 : i64} {
  func.func @ema_linear_kernel(%arg0: i32, %arg1: memref<1x8x256xf32, #tpu.memory_space<vmem>>, %arg2: memref<256x256xbf16, #tpu.memory_space<vmem>>, %arg3: memref<4x256xf32, #tpu.memory_space<vmem>>, %arg4: memref<3x256x256xbf16, #tpu.memory_space<vmem>>, %arg5: memref<256x256xbf16, #tpu.memory_space<vmem>>, %arg6: memref<256x128xbf16, #tpu.memory_space<vmem>>, %arg7: memref<1x128xf32, #tpu.memory_space<vmem>>, %arg8: memref<1x8x128xf32, #tpu.memory_space<vmem>>) attributes {dimension_semantics = [#tpu.dimension_semantics<parallel>], iteration_bounds = array<i64: 2>, scalar_prefetch = 0 : i64, scratch_operands = 0 : i64, tpu.core_type = #tpu.core_type<tc>, window_params = [{transform_indices = @transform_0, window_bounds = array<i64: 1, 8, 256>}, {pipeline_mode = #tpu.pipeline_mode<synchronous>, transform_indices = @transform_1, window_bounds = array<i64: 256, 256>}, {pipeline_mode = #tpu.pipeline_mode<synchronous>, transform_indices = @transform_2, window_bounds = array<i64: 4, 256>}, {pipeline_mode = #tpu.pipeline_mode<synchronous>, transform_indices = @transform_3, window_bounds = array<i64: 3, 256, 256>}, {pipeline_mode = #tpu.pipeline_mode<synchronous>, transform_indices = @transform_4, window_bounds = array<i64: 256, 256>}, {pipeline_mode = #tpu.pipeline_mode<synchronous>, transform_indices = @transform_5, window_bounds = array<i64: 256, 128>}, {pipeline_mode = #tpu.pipeline_mode<synchronous>, transform_indices = @transform_6, window_bounds = array<i64: 1, 128>}, {transform_indices = @transform_7, window_bounds = array<i64: 1, 8, 128>}]} {
    %c0 = arith.constant 0 : index
    %c0_0 = arith.constant 0 : index
    %c0_1 = arith.constant 0 : index
    %0 = vector.load %arg1[%c0, %c0_0, %c0_1] : memref<1x8x256xf32, #tpu.memory_space<vmem>>, vector<1x8x256xf32>
    %1 = vector.shape_cast %0 : vector<1x8x256xf32> to vector<8x256xf32>
    %2 = arith.truncf %1 : vector<8x256xf32> to vector<8x256xbf16>
    %c0_2 = arith.constant 0 : index
    %c0_3 = arith.constant 0 : index
    %3 = vector.load %arg3[%c0_2, %c0_3] : memref<4x256xf32, #tpu.memory_space<vmem>>, vector<4x256xf32>
    %4 = vector.extract_strided_slice %3 {offsets = [0, 0], sizes = [1, 256], strides = [1, 1]} : vector<4x256xf32> to vector<1x256xf32>
    %5 = vector.extract_strided_slice %3 {offsets = [1, 0], sizes = [1, 256], strides = [1, 1]} : vector<4x256xf32> to vector<1x256xf32>
    %6 = vector.extract_strided_slice %3 {offsets = [2, 0], sizes = [1, 256], strides = [1, 1]} : vector<4x256xf32> to vector<1x256xf32>
    %7 = vector.extract_strided_slice %3 {offsets = [3, 0], sizes = [1, 256], strides = [1, 1]} : vector<4x256xf32> to vector<1x256xf32>
    %c0_4 = arith.constant 0 : index
    %c0_5 = arith.constant 0 : index
    %8 = vector.load %arg2[%c0_4, %c0_5] : memref<256x256xbf16, #tpu.memory_space<vmem>>, vector<256x256xbf16>
    %cst = arith.constant dense<0.000000e+00> : vector<8x256xf32>
    %9 = tpu.matmul %2, %8, %cst {dimension_numbers = #tpu.dot_dimension_numbers<[1], [0], [0], [1], [0, 0, 1, 1], [], []>} : vector<8x256xbf16>, vector<256x256xbf16>, vector<8x256xf32> -> vector<8x256xf32>
    %10 = vector.broadcast %4 : vector<1x256xf32> to vector<8x256xf32>
    %11 = arith.addf %9, %10 : vector<8x256xf32>
    %cst_6 = arith.constant dense<0.000000e+00> : vector<256xf32>
    %12 = vector.multi_reduction <add>, %11, %cst_6 [0] : vector<8x256xf32> to vector<256xf32>
    %13 = vector.shape_cast %12 : vector<256xf32> to vector<1x256xf32>
    %cst_7 = arith.constant 8.000000e+00 : f32
    %14 = vector.broadcast %cst_7 : f32 to vector<1x256xf32>
    %15 = arith.divf %13, %14 : vector<1x256xf32>
    %16 = arith.negf %11 : vector<8x256xf32>
    %17 = math.exp %16 : vector<8x256xf32>
    %cst_8 = arith.constant 1.000000e+00 : f32
    %18 = vector.broadcast %cst_8 : f32 to vector<8x256xf32>
    %19 = arith.addf %18, %17 : vector<8x256xf32>
    %20 = arith.divf %18, %19 : vector<8x256xf32>
    %21 = arith.mulf %1, %20 : vector<8x256xf32>
    %22 = arith.negf %15 : vector<1x256xf32>
    %23 = math.exp %22 : vector<1x256xf32>
    %cst_9 = arith.constant 1.000000e+00 : f32
    %24 = vector.broadcast %cst_9 : f32 to vector<1x256xf32>
    %25 = arith.addf %24, %23 : vector<1x256xf32>
    %26 = arith.divf %24, %25 : vector<1x256xf32>
    %27 = vector.broadcast %26 : vector<1x256xf32> to vector<8x256xf32>
    %28 = arith.mulf %21, %27 : vector<8x256xf32>
    %cst_10 = arith.constant dense<0.000000e+00> : vector<256xf32>
    %29 = vector.multi_reduction <add>, %28, %cst_10 [0] : vector<8x256xf32> to vector<256xf32>
    %30 = vector.shape_cast %29 : vector<256xf32> to vector<1x256xf32>
    %cst_11 = arith.constant 8.000000e+00 : f32
    %31 = vector.broadcast %cst_11 : f32 to vector<1x256xf32>
    %32 = arith.divf %30, %31 : vector<1x256xf32>
    %33 = vector.broadcast %32 : vector<1x256xf32> to vector<8x256xf32>
    %34 = arith.subf %28, %33 : vector<8x256xf32>
    %35 = arith.mulf %34, %34 : vector<8x256xf32>
    %cst_12 = arith.constant dense<0.000000e+00> : vector<256xf32>
    %36 = vector.multi_reduction <add>, %35, %cst_12 [0] : vector<8x256xf32> to vector<256xf32>
    %37 = vector.shape_cast %36 : vector<256xf32> to vector<1x256xf32>
    %cst_13 = arith.constant 8.000000e+00 : f32
    %38 = vector.broadcast %cst_13 : f32 to vector<1x256xf32>
    %39 = arith.divf %37, %38 : vector<1x256xf32>
    %40 = vector.broadcast %32 : vector<1x256xf32> to vector<8x256xf32>
    %41 = arith.subf %28, %40 : vector<8x256xf32>
    %cst_14 = arith.constant 9.99999974E-6 : f32
    %42 = vector.broadcast %cst_14 : f32 to vector<1x256xf32>
    %43 = arith.addf %39, %42 : vector<1x256xf32>
    %44 = math.rsqrt %43 : vector<1x256xf32>
    %45 = vector.broadcast %44 : vector<1x256xf32> to vector<8x256xf32>
    %46 = arith.mulf %41, %45 : vector<8x256xf32>
    %47 = vector.broadcast %5 : vector<1x256xf32> to vector<8x256xf32>
    %48 = arith.mulf %46, %47 : vector<8x256xf32>
    %49 = vector.broadcast %6 : vector<1x256xf32> to vector<8x256xf32>
    %50 = arith.addf %48, %49 : vector<8x256xf32>
    %51 = tpu.iota {dimensions = array<i32: 0>} : vector<8x1xi32>
    %c1_i32 = arith.constant 1 : i32
    %52 = tpu.dynamic_rotate %1 by %c1_i32 dim 0 : vector<8x256xf32>, i32 -> vector<8x256xf32>
    %c0_i32 = arith.constant 0 : i32
    %53 = vector.broadcast %c0_i32 : i32 to vector<8x1xi32>
    %54 = arith.cmpi sgt, %51, %53 : vector<8x1xi32>
    %55 = arith.extui %54 : vector<8x1xi1> to vector<8x1xi32>
    %56 = arith.sitofp %55 : vector<8x1xi32> to vector<8x1xf32>
    %57 = vector.broadcast %56 : vector<8x1xf32> to vector<8x256xf32>
    %58 = arith.mulf %52, %57 : vector<8x256xf32>
    %59 = arith.truncf %58 : vector<8x256xf32> to vector<8x256xbf16>
    %c7_i32 = arith.constant 7 : i32
    %60 = tpu.dynamic_rotate %1 by %c7_i32 dim 0 : vector<8x256xf32>, i32 -> vector<8x256xf32>
    %c7_i32_15 = arith.constant 7 : i32
    %61 = vector.broadcast %c7_i32_15 : i32 to vector<8x1xi32>
    %62 = arith.cmpi slt, %51, %61 : vector<8x1xi32>
    %63 = arith.extui %62 : vector<8x1xi1> to vector<8x1xi32>
    %64 = arith.sitofp %63 : vector<8x1xi32> to vector<8x1xf32>
    %65 = vector.broadcast %64 : vector<8x1xf32> to vector<8x256xf32>
    %66 = arith.mulf %60, %65 : vector<8x256xf32>
    %67 = arith.truncf %66 : vector<8x256xf32> to vector<8x256xbf16>
    %c0_16 = arith.constant 0 : index
    %c0_17 = arith.constant 0 : index
    %c0_18 = arith.constant 0 : index
    %68 = vector.load %arg4[%c0_16, %c0_17, %c0_18] : memref<3x256x256xbf16, #tpu.memory_space<vmem>>, vector<1x256x256xbf16>
    %69 = vector.shape_cast %68 : vector<1x256x256xbf16> to vector<256x256xbf16>
    %cst_19 = arith.constant dense<0.000000e+00> : vector<8x256xf32>
    %70 = tpu.matmul %59, %69, %cst_19 {dimension_numbers = #tpu.dot_dimension_numbers<[1], [0], [0], [1], [0, 0, 1, 1], [], []>} : vector<8x256xbf16>, vector<256x256xbf16>, vector<8x256xf32> -> vector<8x256xf32>
    %c1 = arith.constant 1 : index
    %c0_20 = arith.constant 0 : index
    %c0_21 = arith.constant 0 : index
    %71 = vector.load %arg4[%c1, %c0_20, %c0_21] : memref<3x256x256xbf16, #tpu.memory_space<vmem>>, vector<1x256x256xbf16>
    %72 = vector.shape_cast %71 : vector<1x256x256xbf16> to vector<256x256xbf16>
    %cst_22 = arith.constant dense<0.000000e+00> : vector<8x256xf32>
    %73 = tpu.matmul %2, %72, %cst_22 {dimension_numbers = #tpu.dot_dimension_numbers<[1], [0], [0], [1], [0, 0, 1, 1], [], []>} : vector<8x256xbf16>, vector<256x256xbf16>, vector<8x256xf32> -> vector<8x256xf32>
    %74 = arith.addf %70, %73 : vector<8x256xf32>
    %c2 = arith.constant 2 : index
    %c0_23 = arith.constant 0 : index
    %c0_24 = arith.constant 0 : index
    %75 = vector.load %arg4[%c2, %c0_23, %c0_24] : memref<3x256x256xbf16, #tpu.memory_space<vmem>>, vector<1x256x256xbf16>
    %76 = vector.shape_cast %75 : vector<1x256x256xbf16> to vector<256x256xbf16>
    %cst_25 = arith.constant dense<0.000000e+00> : vector<8x256xf32>
    %77 = tpu.matmul %67, %76, %cst_25 {dimension_numbers = #tpu.dot_dimension_numbers<[1], [0], [0], [1], [0, 0, 1, 1], [], []>} : vector<8x256xbf16>, vector<256x256xbf16>, vector<8x256xf32> -> vector<8x256xf32>
    %78 = arith.addf %74, %77 : vector<8x256xf32>
    %79 = vector.broadcast %7 : vector<1x256xf32> to vector<8x256xf32>
    %80 = arith.addf %78, %79 : vector<8x256xf32>
    %cst_26 = arith.constant dense<0.000000e+00> : vector<256xf32>
    %81 = vector.multi_reduction <add>, %50, %cst_26 [0] : vector<8x256xf32> to vector<256xf32>
    %82 = vector.shape_cast %81 : vector<256xf32> to vector<1x256xf32>
    %cst_27 = arith.constant 8.000000e+00 : f32
    %83 = vector.broadcast %cst_27 : f32 to vector<1x256xf32>
    %84 = arith.divf %82, %83 : vector<1x256xf32>
    %cst_28 = arith.constant dense<0.000000e+00> : vector<256xf32>
    %85 = vector.multi_reduction <add>, %80, %cst_28 [0] : vector<8x256xf32> to vector<256xf32>
    %86 = vector.shape_cast %85 : vector<256xf32> to vector<1x256xf32>
    %cst_29 = arith.constant 8.000000e+00 : f32
    %87 = vector.broadcast %cst_29 : f32 to vector<1x256xf32>
    %88 = arith.divf %86, %87 : vector<1x256xf32>
    %89 = tpu.concatenate %84, %88 in 0 : vector<1x256xf32>, vector<1x256xf32> -> vector<2x256xf32>
    %90 = tpu.iota {dimensions = array<i32: 1>} : vector<2x256xi32>
    %c31_i32 = arith.constant 31 : i32
    %91 = vector.broadcast %c31_i32 : i32 to vector<2x256xi32>
    %92 = arith.andi %90, %91 : vector<2x256xi32>
    %c255_i32 = arith.constant 255 : i32
    %93 = tpu.dynamic_rotate %89 by %c255_i32 dim 1 : vector<2x256xf32>, i32 -> vector<2x256xf32>
    %c31_i32_30 = arith.constant 31 : i32
    %94 = tpu.dynamic_rotate %89 by %c31_i32_30 dim 1 : vector<2x256xf32>, i32 -> vector<2x256xf32>
    %c31_i32_31 = arith.constant 31 : i32
    %95 = vector.broadcast %c31_i32_31 : i32 to vector<2x256xi32>
    %96 = arith.cmpi slt, %92, %95 : vector<2x256xi32>
    %97 = arith.select %96, %93, %94 : vector<2x256xi1>, vector<2x256xf32>
    %98 = arith.maximumf %89, %97 : vector<2x256xf32>
    %c254_i32 = arith.constant 254 : i32
    %99 = tpu.dynamic_rotate %98 by %c254_i32 dim 1 : vector<2x256xf32>, i32 -> vector<2x256xf32>
    %c30_i32 = arith.constant 30 : i32
    %100 = tpu.dynamic_rotate %98 by %c30_i32 dim 1 : vector<2x256xf32>, i32 -> vector<2x256xf32>
    %c30_i32_32 = arith.constant 30 : i32
    %101 = vector.broadcast %c30_i32_32 : i32 to vector<2x256xi32>
    %102 = arith.cmpi slt, %92, %101 : vector<2x256xi32>
    %103 = arith.select %102, %99, %100 : vector<2x256xi1>, vector<2x256xf32>
    %104 = arith.maximumf %98, %103 : vector<2x256xf32>
    %c252_i32 = arith.constant 252 : i32
    %105 = tpu.dynamic_rotate %104 by %c252_i32 dim 1 : vector<2x256xf32>, i32 -> vector<2x256xf32>
    %c28_i32 = arith.constant 28 : i32
    %106 = tpu.dynamic_rotate %104 by %c28_i32 dim 1 : vector<2x256xf32>, i32 -> vector<2x256xf32>
    %c28_i32_33 = arith.constant 28 : i32
    %107 = vector.broadcast %c28_i32_33 : i32 to vector<2x256xi32>
    %108 = arith.cmpi slt, %92, %107 : vector<2x256xi32>
    %109 = arith.select %108, %105, %106 : vector<2x256xi1>, vector<2x256xf32>
    %110 = arith.maximumf %104, %109 : vector<2x256xf32>
    %c248_i32 = arith.constant 248 : i32
    %111 = tpu.dynamic_rotate %110 by %c248_i32 dim 1 : vector<2x256xf32>, i32 -> vector<2x256xf32>
    %c24_i32 = arith.constant 24 : i32
    %112 = tpu.dynamic_rotate %110 by %c24_i32 dim 1 : vector<2x256xf32>, i32 -> vector<2x256xf32>
    %c24_i32_34 = arith.constant 24 : i32
    %113 = vector.broadcast %c24_i32_34 : i32 to vector<2x256xi32>
    %114 = arith.cmpi slt, %92, %113 : vector<2x256xi32>
    %115 = arith.select %114, %111, %112 : vector<2x256xi1>, vector<2x256xf32>
    %116 = arith.maximumf %110, %115 : vector<2x256xf32>
    %c240_i32 = arith.constant 240 : i32
    %117 = tpu.dynamic_rotate %116 by %c240_i32 dim 1 : vector<2x256xf32>, i32 -> vector<2x256xf32>
    %c16_i32 = arith.constant 16 : i32
    %118 = tpu.dynamic_rotate %116 by %c16_i32 dim 1 : vector<2x256xf32>, i32 -> vector<2x256xf32>
    %c16_i32_35 = arith.constant 16 : i32
    %119 = vector.broadcast %c16_i32_35 : i32 to vector<2x256xi32>
    %120 = arith.cmpi slt, %92, %119 : vector<2x256xi32>
    %121 = arith.select %120, %117, %118 : vector<2x256xi1>, vector<2x256xf32>
    %122 = arith.maximumf %116, %121 : vector<2x256xf32>
    %123 = arith.subf %89, %122 : vector<2x256xf32>
    %124 = math.exp %123 : vector<2x256xf32>
    %c255_i32_36 = arith.constant 255 : i32
    %125 = tpu.dynamic_rotate %124 by %c255_i32_36 dim 1 : vector<2x256xf32>, i32 -> vector<2x256xf32>
    %c31_i32_37 = arith.constant 31 : i32
    %126 = tpu.dynamic_rotate %124 by %c31_i32_37 dim 1 : vector<2x256xf32>, i32 -> vector<2x256xf32>
    %c31_i32_38 = arith.constant 31 : i32
    %127 = vector.broadcast %c31_i32_38 : i32 to vector<2x256xi32>
    %128 = arith.cmpi slt, %92, %127 : vector<2x256xi32>
    %129 = arith.select %128, %125, %126 : vector<2x256xi1>, vector<2x256xf32>
    %130 = arith.addf %124, %129 : vector<2x256xf32>
    %c254_i32_39 = arith.constant 254 : i32
    %131 = tpu.dynamic_rotate %130 by %c254_i32_39 dim 1 : vector<2x256xf32>, i32 -> vector<2x256xf32>
    %c30_i32_40 = arith.constant 30 : i32
    %132 = tpu.dynamic_rotate %130 by %c30_i32_40 dim 1 : vector<2x256xf32>, i32 -> vector<2x256xf32>
    %c30_i32_41 = arith.constant 30 : i32
    %133 = vector.broadcast %c30_i32_41 : i32 to vector<2x256xi32>
    %134 = arith.cmpi slt, %92, %133 : vector<2x256xi32>
    %135 = arith.select %134, %131, %132 : vector<2x256xi1>, vector<2x256xf32>
    %136 = arith.addf %130, %135 : vector<2x256xf32>
    %c252_i32_42 = arith.constant 252 : i32
    %137 = tpu.dynamic_rotate %136 by %c252_i32_42 dim 1 : vector<2x256xf32>, i32 -> vector<2x256xf32>
    %c28_i32_43 = arith.constant 28 : i32
    %138 = tpu.dynamic_rotate %136 by %c28_i32_43 dim 1 : vector<2x256xf32>, i32 -> vector<2x256xf32>
    %c28_i32_44 = arith.constant 28 : i32
    %139 = vector.broadcast %c28_i32_44 : i32 to vector<2x256xi32>
    %140 = arith.cmpi slt, %92, %139 : vector<2x256xi32>
    %141 = arith.select %140, %137, %138 : vector<2x256xi1>, vector<2x256xf32>
    %142 = arith.addf %136, %141 : vector<2x256xf32>
    %c248_i32_45 = arith.constant 248 : i32
    %143 = tpu.dynamic_rotate %142 by %c248_i32_45 dim 1 : vector<2x256xf32>, i32 -> vector<2x256xf32>
    %c24_i32_46 = arith.constant 24 : i32
    %144 = tpu.dynamic_rotate %142 by %c24_i32_46 dim 1 : vector<2x256xf32>, i32 -> vector<2x256xf32>
    %c24_i32_47 = arith.constant 24 : i32
    %145 = vector.broadcast %c24_i32_47 : i32 to vector<2x256xi32>
    %146 = arith.cmpi slt, %92, %145 : vector<2x256xi32>
    %147 = arith.select %146, %143, %144 : vector<2x256xi1>, vector<2x256xf32>
    %148 = arith.addf %142, %147 : vector<2x256xf32>
    %c240_i32_48 = arith.constant 240 : i32
    %149 = tpu.dynamic_rotate %148 by %c240_i32_48 dim 1 : vector<2x256xf32>, i32 -> vector<2x256xf32>
    %c16_i32_49 = arith.constant 16 : i32
    %150 = tpu.dynamic_rotate %148 by %c16_i32_49 dim 1 : vector<2x256xf32>, i32 -> vector<2x256xf32>
    %c16_i32_50 = arith.constant 16 : i32
    %151 = vector.broadcast %c16_i32_50 : i32 to vector<2x256xi32>
    %152 = arith.cmpi slt, %92, %151 : vector<2x256xi32>
    %153 = arith.select %152, %149, %150 : vector<2x256xi1>, vector<2x256xf32>
    %154 = arith.addf %148, %153 : vector<2x256xf32>
    %155 = arith.divf %124, %154 : vector<2x256xf32>
    %156 = vector.extract_strided_slice %155 {offsets = [0, 0], sizes = [1, 256], strides = [1, 1]} : vector<2x256xf32> to vector<1x256xf32>
    %157 = vector.extract_strided_slice %155 {offsets = [1, 0], sizes = [1, 256], strides = [1, 1]} : vector<2x256xf32> to vector<1x256xf32>
    %158 = vector.broadcast %156 : vector<1x256xf32> to vector<8x256xf32>
    %159 = arith.mulf %80, %158 : vector<8x256xf32>
    %160 = vector.broadcast %157 : vector<1x256xf32> to vector<8x256xf32>
    %161 = arith.mulf %50, %160 : vector<8x256xf32>
    %162 = arith.addf %159, %161 : vector<8x256xf32>
    %163 = arith.truncf %162 : vector<8x256xf32> to vector<8x256xbf16>
    %c0_51 = arith.constant 0 : index
    %c0_52 = arith.constant 0 : index
    %164 = vector.load %arg5[%c0_51, %c0_52] : memref<256x256xbf16, #tpu.memory_space<vmem>>, vector<256x256xbf16>
    %cst_53 = arith.constant dense<0.000000e+00> : vector<8x256xf32>
    %165 = tpu.matmul %163, %164, %cst_53 {dimension_numbers = #tpu.dot_dimension_numbers<[1], [0], [0], [1], [0, 0, 1, 1], [], []>} : vector<8x256xbf16>, vector<256x256xbf16>, vector<8x256xf32> -> vector<8x256xf32>
    %166 = arith.negf %165 : vector<8x256xf32>
    %167 = math.exp %166 : vector<8x256xf32>
    %cst_54 = arith.constant 1.000000e+00 : f32
    %168 = vector.broadcast %cst_54 : f32 to vector<8x256xf32>
    %169 = arith.addf %168, %167 : vector<8x256xf32>
    %170 = arith.divf %168, %169 : vector<8x256xf32>
    %171 = arith.mulf %1, %170 : vector<8x256xf32>
    %172 = arith.truncf %171 : vector<8x256xf32> to vector<8x256xbf16>
    %c0_55 = arith.constant 0 : index
    %c0_56 = arith.constant 0 : index
    %173 = vector.load %arg6[%c0_55, %c0_56] : memref<256x128xbf16, #tpu.memory_space<vmem>>, vector<256x128xbf16>
    %cst_57 = arith.constant dense<0.000000e+00> : vector<8x128xf32>
    %174 = tpu.matmul %172, %173, %cst_57 {dimension_numbers = #tpu.dot_dimension_numbers<[1], [0], [0], [1], [0, 0, 1, 1], [], []>} : vector<8x256xbf16>, vector<256x128xbf16>, vector<8x128xf32> -> vector<8x128xf32>
    %c0_58 = arith.constant 0 : index
    %c0_59 = arith.constant 0 : index
    %175 = vector.load %arg7[%c0_58, %c0_59] : memref<1x128xf32, #tpu.memory_space<vmem>>, vector<1x128xf32>
    %176 = vector.broadcast %175 : vector<1x128xf32> to vector<8x128xf32>
    %177 = arith.addf %174, %176 : vector<8x128xf32>
    %c0_60 = arith.constant 0 : index
    %c0_61 = arith.constant 0 : index
    %c0_62 = arith.constant 0 : index
    %178 = vector.load %arg8[%c0_60, %c0_61, %c0_62] : memref<1x8x128xf32, #tpu.memory_space<vmem>>, vector<1x8x128xf32>
    %179 = vector.shape_cast %178 : vector<1x8x128xf32> to vector<8x128xf32>
    %180 = vector.shape_cast %177 : vector<8x128xf32> to vector<1x8x128xf32>
    tpu.vector_store %arg8[%c0_60, %c0_61, %c0_62], %180 {strides = array<i32>} : memref<1x8x128xf32, #tpu.memory_space<vmem>>, vector<1x8x128xf32>,
    return
  }
  func.func @transform_0(%arg0: i32) -> (i32, i32, i32) {
    %c0_i32 = arith.constant 0 : i32
    %c0_i32_0 = arith.constant 0 : i32
    %c0_i32_1 = arith.constant 0 : i32
    return %arg0, %c0_i32, %c0_i32_0 : i32, i32, i32
  }
  func.func @transform_1(%arg0: i32) -> (i32, i32) {
    %c0_i32 = arith.constant 0 : i32
    %c0_i32_0 = arith.constant 0 : i32
    %c0_i32_1 = arith.constant 0 : i32
    return %c0_i32, %c0_i32_0 : i32, i32
  }
  func.func @transform_2(%arg0: i32) -> (i32, i32) {
    %c0_i32 = arith.constant 0 : i32
    %c0_i32_0 = arith.constant 0 : i32
    %c0_i32_1 = arith.constant 0 : i32
    return %c0_i32, %c0_i32_0 : i32, i32
  }
  func.func @transform_3(%arg0: i32) -> (i32, i32, i32) {
    %c0_i32 = arith.constant 0 : i32
    %c0_i32_0 = arith.constant 0 : i32
    %c0_i32_1 = arith.constant 0 : i32
    %c0_i32_2 = arith.constant 0 : i32
    return %c0_i32, %c0_i32_0, %c0_i32_1 : i32, i32, i32
  }
  func.func @transform_4(%arg0: i32) -> (i32, i32) {
    %c0_i32 = arith.constant 0 : i32
    %c0_i32_0 = arith.constant 0 : i32
    %c0_i32_1 = arith.constant 0 : i32
    return %c0_i32, %c0_i32_0 : i32, i32
  }
  func.func @transform_5(%arg0: i32) -> (i32, i32) {
    %c0_i32 = arith.constant 0 : i32
    %c0_i32_0 = arith.constant 0 : i32
    %c0_i32_1 = arith.constant 0 : i32
    return %c0_i32, %c0_i32_0 : i32, i32
  }
  func.func @transform_6(%arg0: i32) -> (i32, i32) {
    %c0_i32 = arith.constant 0 : i32
    %c0_i32_0 = arith.constant 0 : i32
    %c0_i32_1 = arith.constant 0 : i32
    return %c0_i32, %c0_i32_0 : i32, i32
  }
  func.func @transform_7(%arg0: i32) -> (i32, i32, i32) {
    %c0_i32 = arith.constant 0 : i32
    %c0_i32_0 = arith.constant 0 : i32
    %c0_i32_1 = arith.constant 0 : i32
    return %arg0, %c0_i32, %c0_i32_0 : i32, i32, i32
  }
}

</mosaic_0001>

<bundles_post_ra>
// kernel: tile.23
= control target key start
LH: loop header
LB: loop body
LE: loop exit
PB: predicated region body
PF: predicated region fallthrough
CT: control target
= control target key end

     0   :  { %s22_s0 = inlined_call_operand.vmem [shape: f32[32], index: 0, kind: input, shape index: {}]   ;;  %s23_s1 = inlined_call_operand.vmem [shape: f32[8,32], index: 1, kind: output, shape index: {}]  }
   0x1   :  { %v4_v0 = vld [vmem:[%s22_s0] ss:$0 sm:$0xff] }
   0x2   :  { %5 = vst [vmem:[%s23_s1] sm:$0xff] %v4_v0 }

// kernel: tile.36
= control target key start
LH: loop header
LB: loop body
LE: loop exit
PB: predicated region body
PF: predicated region fallthrough
CT: control target
= control target key end

     0   :  { %s7_s6 = smov 3  ;;  %s14_s9 = smov 3  ;;  %vm4_vm0 = vcmask 261120   ;;  %vm11_vm1 = vcmask 1048320   ;;  %vm18_vm2 = vcmask 785920   ;;  %vm25_vm3 = vcmask 523520   ;;  %s76_s0 = inlined_call_operand.vmem [shape: f32[8,32], index: 0, kind: input, shape index: {}]   ;;  %s77_s1 = inlined_call_operand.vmem [shape: f32[1,256], index: 1, kind: output, shape index: {}]  }
   0x1   :  { %v38_v0 = vld [vmem:[%s76_s0 + $0x3] ss:$4 sm:%s7_s6]   ;;  %s45_s10 = smov 96   ;;  %s21_s11 = smov 3  ;;  %v39_v1 = vld [vmem:[%s76_s0 + $0x2] ss:$4 sm:%s14_s9]  }
   0x2   :  { %9 = vrot.lane.b32.xlu0 %v38_v0, %s45_s10  ;;  %v40_v2 = vld [vmem:[%s76_s0 + $0x1] ss:$4 sm:%s21_s11]   ;;  %s2_s16 = smov 3  ;;  %s46_s17 = smov 32  }
   0x3   :  { %23 = vrot.lane.b32.xlu1 %v40_v2, %s46_s17  ;;  %v3_v3 = vld [vmem:[%s76_s0] ss:$4 sm:%s2_s16]   ;;  %s47_s0 = smov 64  }
   0x4   :  { %5 = vst.msk [vmem:[#allocation0] ss:$8 sm:$0x3] %vm4_vm0, %v3_v3  }
   0x6   :  { %16 = vrot.lane.b32.xlu0 %v39_v1, %s47_s0 }
  0x74   :  { %v10_v4 = vpop.permute.xlu0 %9  }
  0x75   :  { %12 = vst.msk [vmem:[#allocation0] ss:$8 sm:$0x3] %vm11_vm1, %v10_v4   ;;  %v24_v5 = vpop.permute.xlu1 %23  }
  0x78   :  { %v17_v6 = vpop.permute.xlu0 %16  }
  0x79   :  { %19 = vst.msk [vmem:[#allocation0] ss:$8 sm:$0x3] %vm18_vm2, %v17_v6  }
  0x7a   :  { %26 = vst.msk [vmem:[#allocation0] ss:$8 sm:$0x3] %vm25_vm3, %v24_v5  }
  0x81   :  { %v30_v7 = vld [vmem:[#allocation0] sm:$0x1]  ;;  %v34_v8 = vld [vmem:[#allocation0 + $0x8] sm:$0x1] }
  0x82   :  { %32 = vst [vmem:[%s77_s1] sm:$0x1] %v30_v7  ;;  %41 = vst [vmem:[%s77_s1 + $0x1] sm:$0x1] %v34_v8 }

// kernel: midiformer_forward.1
= control target key start
LH: loop header
LB: loop body
LE: loop exit
PB: predicated region body
PF: predicated region fallthrough
CT: control target
= control target key end

     0   :  { %s2781_s24 = smov 0   ;;  %s3654_s0 = inlined_call_operand.vmem [shape: f32[2,8,256], index: 0, kind: input, shape index: {}]   ;;  %s3655_s1 = inlined_call_operand.vmem [shape: bf16[256,256], index: 1, kind: input, shape index: {}]   ;;  %s3656_s2 = inlined_call_operand.vmem [shape: f32[4,256], index: 2, kind: input, shape index: {}]   ;;  %s3657_s3 = inlined_call_operand.vmem [shape: bf16[3,256,256], index: 3, kind: input, shape index: {}]   ;;  %s3658_s4 = inlined_call_operand.vmem [shape: bf16[256,256], index: 4, kind: input, shape index: {}]   ;;  %s3659_s5 = inlined_call_operand.vmem [shape: bf16[256,128], index: 5, kind: input, shape index: {}]   ;;  %s3660_s6 = inlined_call_operand.vmem [shape: f32[1,128], index: 6, kind: input, shape index: {}]   ;;  %s3661_s7 = inlined_call_operand.vmem [shape: f32[2,8,128], index: 7, kind: output, shape index: {}]  }
   0x1 LB: > { %s2127_s25 = sadd.s32 4294967295, %s2728_s24   ;;  %p2131_p0 = scmp.ge.s32.totalorder %s2728_s24, 1  ;;  %s2728_s24 = sphi %s2781_s24, %s17_s24  }
   0x2   : > { %p237_p1 = scmp.lt.s32.totalorder %s2728_s24, 3 }
   0x4   : > { %p238_p2 = pnand %p2131_p0, %p237_p1 }
   0x5   : > { %v2428_v0 = vld [vmem:[%s3655_s1 + $0x4] ss:$8 sps:$4 sm:$0xff] (!%p238_p2)   ;;  %v2430_v1 = vld [vmem:[%s3655_s1] ss:$8 sps:$4 sm:$0xff] (!%p238_p2)   ;;  %v2434_v4 = vld [vmem:[%s3655_s1 + $0x14] ss:$8 sps:$4 sm:$0xff] (!%p238_p2)   ;;  %v316_v51 = vlaneseq (!%p238_p2) }
   0x6   : > { %241 = sbr.rel (%p238_p2) target bundleno = 2123 (0x84b), region = 48  ;;  %494 = vmatprep.subr.bf16.mxu0 (!%p238_p2), %v2428_v0  ;;  %v2431_v2 = vld [vmem:[%s3657_s3 + $0x104] ss:$8 sps:$4 sm:$0xff] (!%p238_p2)   ;;  %v2433_v3 = vld [vmem:[%s3657_s3 + $0x100] ss:$8 sps:$4 sm:$0xff] (!%p238_p2)   ;;  %p268_p3 = scmp.lt.s32.totalorder (!%p238_p2), %s2127_s25, 1 }
   0x7   : > { %495 = vmatpush1.bf16.msra.mxu0 (!%p238_p2), %v2430_v1  ;;  %v2436_v5 = vld [vmem:[%s3655_s1 + $0x10] ss:$8 sps:$4 sm:$0xff] (!%p238_p2)   ;;  %901 = vmatprep.subr.bf16.mxu1 (!%p238_p2), %v2431_v2  ;;  %v2437_v6 = vld [vmem:[%s3657_s3 + $0x114] ss:$8 sps:$4 sm:$0xff] (!%p238_p2)   ;;  %v2440_v8 = vld [vmem:[%s3655_s1 + $0x24] ss:$8 sps:$4 sm:$0xff] (!%p238_p2)  }
   0x8   : > { %902 = vmatpush1.bf16.msra.mxu1 (!%p238_p2), %v2433_v3  ;;  %496 = vmatprep.subr.bf16.mxu0 (!%p238_p2), %v2434_v4  ;;  %v2439_v7 = vld [vmem:[%s3657_s3 + $0x110] ss:$8 sps:$4 sm:$0xff] (!%p238_p2)   ;;  %v2442_v9 = vld [vmem:[%s3655_s1 + $0x20] ss:$8 sps:$4 sm:$0xff] (!%p238_p2)   ;;  %v2443_v10 = vld [vmem:[%s3657_s3 + $0x124] ss:$8 sps:$4 sm:$0xff] (!%p238_p2)  }
   0x9   : > { %903 = vmatprep.subr.bf16.mxu1 (!%p238_p2), %v2437_v6  ;;  %v2446_v11 = vld [vmem:[%s3655_s1 + $0x34] ss:$8 sps:$4 sm:$0xff] (!%p238_p2)   ;;  %v2445_v12 = vld [vmem:[%s3657_s3 + $0x120] ss:$8 sps:$4 sm:$0xff] (!%p238_p2)   ;;  %v2448_v14 = vld [vmem:[%s3655_s1 + $0x30] ss:$8 sps:$4 sm:$0xff] (!%p238_p2)  }
   0xa   : > { %v2449_v13 = vld [vmem:[%s3657_s3 + $0x134] ss:$8 sps:$4 sm:$0xff] (!%p238_p2)   ;;  %v2452_v15 = vld [vmem:[%s3655_s1 + $0x44] ss:$8 sps:$4 sm:$0xff] (!%p238_p2)   ;;  %v2451_v16 = vld [vmem:[%s3657_s3 + $0x130] ss:$8 sps:$4 sm:$0xff] (!%p238_p2)  }
   0xb   : > { %497 = vmatpush1.bf16.msra.mxu0 (!%p238_p2), %v2436_v5  ;;  %v2455_v17 = vld [vmem:[%s3657_s3 + $0x144] ss:$8 sps:$4 sm:$0xff] (!%p238_p2)   ;;  %v2454_v18 = vld [vmem:[%s3655_s1 + $0x40] ss:$8 sps:$4 sm:$0xff] (!%p238_p2)   ;;  %v2458_v19 = vld [vmem:[%s3655_s1 + $0x54] ss:$8 sps:$4 sm:$0xff] (!%p238_p2)  }
   0xc   : > { %498 = vmatprep.subr.bf16.mxu0 (!%p238_p2), %v2440_v8  ;;  %904 = vmatpush1.bf16.msra.mxu1 (!%p238_p2), %v2439_v7  ;;  %v2457_v20 = vld [vmem:[%s3657_s3 + $0x140] ss:$8 sps:$4 sm:$0xff] (!%p238_p2)   ;;  %v2461_v21 = vld [vmem:[%s3657_s3 + $0x154] ss:$8 sps:$4 sm:$0xff] (!%p238_p2)   ;;  %v2460_v22 = vld [vmem:[%s3655_s1 + $0x50] ss:$8 sps:$4 sm:$0xff] (!%p238_p2)  }
   0xd   : > { %905 = vmatprep.subr.bf16.mxu1 %v2443_v10  ;;  %v2464_v23 = vld [vmem:[%s3655_s1 + $0x64] ss:$8 sps:$4 sm:$0xff]   ;;  %v2463_v24 = vld [vmem:[%s3657_s3 + $0x150] ss:$8 sps:$4 sm:$0xff]   ;;  %v2466_v26 = vld [vmem:[%s3655_s1 + $0x60] ss:$8 sps:$4 sm:$0xff]  }
   0xe   : > { %v2467_v25 = vld [vmem:[%s3657_s3 + $0x164] ss:$8 sps:$4 sm:$0xff]   ;;  %v2470_v27 = vld [vmem:[%s3655_s1 + $0x74] ss:$8 sps:$4 sm:$0xff]   ;;  %v2469_v28 = vld [vmem:[%s3657_s3 + $0x160] ss:$8 sps:$4 sm:$0xff]  }
   0xf   : > { %499 = vmatpush1.bf16.msra.mxu0 %v2442_v9  ;;  %v2473_v29 = vld [vmem:[%s3657_s3 + $0x174] ss:$8 sps:$4 sm:$0xff]   ;;  %v2472_v30 = vld [vmem:[%s3655_s1 + $0x70] ss:$8 sps:$4 sm:$0xff]   ;;  %v2476_v31 = vld [vmem:[%s3655_s1 + $0x84] ss:$8 sps:$4 sm:$0xff]  }
  0x10   : > { %500 = vmatprep.subr.bf16.mxu0 %v2446_v11  ;;  %906 = vmatpush1.bf16.msra.mxu1 %v2445_v12  ;;  %v2475_v32 = vld [vmem:[%s3657_s3 + $0x170] ss:$8 sps:$4 sm:$0xff]   ;;  %v2479_v33 = vld [vmem:[%s3657_s3 + $0x184] ss:$8 sps:$4 sm:$0xff]   ;;  %v2478_v34 = vld [vmem:[%s3655_s1 + $0x80] ss:$8 sps:$4 sm:$0xff]  }
  0x11   : > { %907 = vmatprep.subr.bf16.mxu1 %v2449_v13  ;;  %v2482_v35 = vld [vmem:[%s3655_s1 + $0x94] ss:$8 sps:$4 sm:$0xff]   ;;  %s3673_s25 = smov (!%p268_p3, %s2127_s25), 1  ;;  %v2481_v36 = vld [vmem:[%s3657_s3 + $0x180] ss:$8 sps:$4 sm:$0xff]   ;;  %v2966_v56 = vshrl.u32 %v316_v51, 7 }
  0x12   : > { %v2485_v37 = vld [vmem:[%s3657_s3 + $0x194] ss:$8 sps:$4 sm:$0xff]   ;;  %v2484_v38 = vld [vmem:[%s3655_s1 + $0x90] ss:$8 sps:$4 sm:$0xff]   ;;  %v2488_v39 = vld [vmem:[%s3655_s1 + $0xa4] ss:$8 sps:$4 sm:$0xff]  }
  0x13   : > { %501 = vmatpush1.bf16.msra.mxu0 %v2448_v14  ;;  %s2386_s20 = sshll.u32 %s3673_s25, 4  ;;  %v2487_v40 = vld [vmem:[%s3657_s3 + $0x190] ss:$8 sps:$4 sm:$0xff]   ;;  %v2491_v41 = vld [vmem:[%s3657_s3 + $0x1a4] ss:$8 sps:$4 sm:$0xff]   ;;  %vm660_vm0 = vcmp.gt.s32.totalorder %v2966_v56, 0 }
  0x14   : > { %502 = vmatprep.subr.bf16.mxu0 %v2452_v15  ;;  %908 = vmatpush1.bf16.msra.mxu1 %v2451_v16  ;;  %v2490_v42 = vld [vmem:[%s3655_s1 + $0xa0] ss:$8 sps:$4 sm:$0xff]   ;;  %s2928_s8 = scalar_lea.vmem %s3654_s0, %s2386_s20  ;;  %v2494_v43 = vld [vmem:[%s3655_s1 + $0xb4] ss:$8 sps:$4 sm:$0xff]   ;;  %v2496_v47 = vld [vmem:[%s3655_s1 + $0xb0] ss:$8 sps:$4 sm:$0xff]  }
  0x15   : > { %909 = vmatprep.subr.bf16.mxu1 %v2455_v17  ;;  %v2493_v44 = vld [vmem:[%s3657_s3 + $0x1a0] ss:$8 sps:$4 sm:$0xff]   ;;  %v2497_v45 = vld [vmem:[%s3657_s3 + $0x1b4] ss:$8 sps:$4 sm:$0xff]   ;;  %v2500_v49 = vld [vmem:[%s3655_s1 + $0xc4] ss:$8 sps:$4 sm:$0xff]  }
  0x16   : > { %v2940_v46 = vld [vmem:[%s2928_s8 + $0x8] sm:$0xff]  ;;  %v2499_v50 = vld [vmem:[%s3657_s3 + $0x1b0] ss:$8 sps:$4 sm:$0xff]   ;;  %v2506_v54 = vld [vmem:[%s3655_s1 + $0xd4] ss:$8 sps:$4 sm:$0xff]   ;;  %vm669_vm1 = vcmp.lt.s32.totalorder %v2966_v56, 7 }
  0x17   : > { %503 = vmatpush1.bf16.msra.mxu0 %v2454_v18  ;;  %v281_v48 = vpack.c.bf16 %v2940_v46, %v2940_v46  ;;  %v2503_v52 = vld [vmem:[%s3657_s3 + $0x1c4] ss:$8 sps:$4 sm:$0xff]   ;;  %v2502_v53 = vld [vmem:[%s3655_s1 + $0xc0] ss:$8 sps:$4 sm:$0xff]   ;;  %v2509_v57 = vld [vmem:[%s3657_s3 + $0x1d4] ss:$8 sps:$4 sm:$0xff]  }
  0x18   : > { %504 = vmatprep.subr.bf16.mxu0 %v2458_v19  ;;  %910 = vmatpush1.bf16.msra.mxu1 %v2457_v20  ;;  %v2505_v55 = vld [vmem:[%s3657_s3 + $0x1c0] ss:$8 sps:$4 sm:$0xff]   ;;  %v2508_v58 = vld [vmem:[%s3655_s1 + $0xd0] ss:$8 sps:$4 sm:$0xff]   ;;  %v2512_v59 = vld [vmem:[%s3655_s1 + $0xe4] ss:$8 sps:$4 sm:$0xff]  }
  0x19   : > { %911 = vmatprep.subr.bf16.mxu1 %v2461_v21  ;;  %526 = vmatprep.mubr.bf16.mxu0 %v281_v48  ;;  %v2511_v60 = vld [vmem:[%s3657_s3 + $0x1d0] ss:$8 sps:$4 sm:$0xff]   ;;  %v2515_v61 = vld [vmem:[%s3657_s3 + $0x1e4] ss:$8 sps:$4 sm:$0xff]   ;;  %v2514_v62 = vld [vmem:[%s3655_s1 + $0xe0] ss:$8 sps:$4 sm:$0xff]  }
  0x1a   : > { %933 = vmatprep.mubr.bf16.mxu1 %v281_v48  ;;  %v659_v63 = vrot.slane %v2940_v46, 7  ;;  %v2518_v0 = vld [vmem:[%s3655_s1 + $0xf4] ss:$8 sps:$4 sm:$0xff]   ;;  %v2730_v1 = vmov 0.0   ;;  %v2517_v3 = vld [vmem:[%s3657_s3 + $0x1e0] ss:$8 sps:$4 sm:$0xff]  }
  0x1b   : > { %505 = vmatpush1.bf16.msra.mxu0 %v2460_v22  ;;  %v2992_v2 = vsel %vm660_vm0, 1.0, %v2730_v1  ;;  %v2520_v4 = vld [vmem:[%s3655_s1 + $0xf0] ss:$8 sps:$4 sm:$0xff]   ;;  %v668_v5 = vrot.slane %v2940_v46, 1  ;;  %v2521_v6 = vld [vmem:[%s3657_s3 + $0x1f4] ss:$8 sps:$4 sm:$0xff]  }
  0x1c   : > { %506 = vmatprep.subr.bf16.mxu0 %v2464_v23  ;;  %912 = vmatpush1.bf16.msra.mxu1 %v2463_v24  ;;  %v3004_v7 = vsel %vm669_vm1, 1.0, %v2730_v1  ;;  %v3007_v8 = vld [vmem:[%s2928_s8] sm:$0xff]  ;;  %v664_v9 = vmul.f32 %v2992_v2, %v659_v63  ;;  %v2523_v11 = vld [vmem:[%s3657_s3 + $0x1f0] ss:$8 sps:$4 sm:$0xff]   ;;  %v2532_v17 = vld [vmem:[%s3657_s3 + $0x14] ss:$8 sps:$4 sm:$0xff]  }
  0x1d   : > { %913 = vmatprep.subr.bf16.mxu1 %v2467_v25  ;;  %v2526_v10 = vld [vmem:[%s3657_s3 + $0x4] ss:$8 sps:$4 sm:$0xff]   ;;  %v673_v12 = vmul.f32 %v3004_v7, %v668_v5  ;;  %v280_v13 = vpack.c.bf16 %v3007_v8, %v3007_v8  ;;  %v2524_v15 = vld [vmem:[%s3657_s3] ss:$8 sps:$4 sm:$0xff]   ;;  %v2535_v20 = vld [vmem:[%s3657_s3 + $0x214] ss:$8 sps:$4 sm:$0xff]  }
  0x1e   : > { %v2529_v14 = vld [vmem:[%s3657_s3 + $0x204] ss:$8 sps:$4 sm:$0xff]   ;;  %v666_v16 = vpack.c.bf16 %v664_v9, %v664_v9  ;;  %v2527_v18 = vld [vmem:[%s3657_s3 + $0x200] ss:$8 sps:$4 sm:$0xff]   ;;  %v2530_v21 = vld [vmem:[%s3657_s3 + $0x10] ss:$8 sps:$4 sm:$0xff]  }
  0x1f   : > { %507 = vmatpush1.bf16.msra.mxu0 %v2466_v26  ;;  %v675_v19 = vpack.c.bf16 %v673_v12, %v673_v12  ;;  %v2538_v22 = vld [vmem:[%s3657_s3 + $0x24] ss:$8 sps:$4 sm:$0xff]   ;;  %v2533_v23 = vld [vmem:[%s3657_s3 + $0x210] ss:$8 sps:$4 sm:$0xff]   ;;  %v2536_v25 = vld [vmem:[%s3657_s3 + $0x20] ss:$8 sps:$4 sm:$0xff]  }
  0x20   : > { %508 = vmatprep.subr.bf16.mxu0 %v2470_v27  ;;  %914 = vmatpush1.bf16.msra.mxu1 %v2469_v28  ;;  %v2541_v24 = vld [vmem:[%s3657_s3 + $0x224] ss:$8 sps:$4 sm:$0xff]   ;;  %v2544_v26 = vld [vmem:[%s3657_s3 + $0x34] ss:$8 sps:$4 sm:$0xff]   ;;  %v2539_v27 = vld [vmem:[%s3657_s3 + $0x220] ss:$8 sps:$4 sm:$0xff]  }
  0x21   : > { %915 = vmatprep.subr.bf16.mxu1 %v2473_v29  ;;  %v2547_v28 = vld [vmem:[%s3657_s3 + $0x234] ss:$8 sps:$4 sm:$0xff]   ;;  %v2542_v29 = vld [vmem:[%s3657_s3 + $0x30] ss:$8 sps:$4 sm:$0xff]   ;;  %v2598_v1 = vld [vmem:[%s3657_s3 + $0xc4] ss:$8 sps:$4 sm:$0xff]  }
  0x22   : > { %v2569_v48 = vld [vmem:[%s3657_s3 + $0x270] ss:$8 sps:$4 sm:$0xff]   ;;  %v2595_v63 = vld [vmem:[%s3657_s3 + $0x2b4] ss:$8 sps:$4 sm:$0xff]   ;;  %v2596_v5 = vld [vmem:[%s3657_s3 + $0xc0] ss:$8 sps:$4 sm:$0xff]  }
  0x23   : > { %509 = vmatpush1.bf16.msra.mxu0 %v2472_v30  ;;  %v2550_v30 = vld [vmem:[%s3657_s3 + $0x44] ss:$8 sps:$4 sm:$0xff]   ;;  %v2599_v9 = vld [vmem:[%s3657_s3 + $0x2c0] ss:$8 sps:$4 sm:$0xff]   ;;  %vm1427_vm2 = vcmask 1040384   ;;  %s2731_s21 = smov 31  }
  0x24   : > { %510 = vmatprep.subr.bf16.mxu0 %v2476_v31  ;;  %916 = vmatpush1.bf16.msra.mxu1 %v2475_v32  ;;  %v2545_v31 = vld [vmem:[%s3657_s3 + $0x230] ss:$8 sps:$4 sm:$0xff]   ;;  %v2553_v32 = vld [vmem:[%s3657_s3 + $0x244] ss:$8 sps:$4 sm:$0xff]   ;;  %s2732_s22 = smov 127   ;;  %s2733_s23 = smov 126  }
  0x25   : > { %917 = vmatprep.subr.bf16.mxu1 %v2479_v33  ;;  %v2548_v33 = vld [vmem:[%s3657_s3 + $0x40] ss:$8 sps:$4 sm:$0xff]   ;;  %v2610_v12 = vld [vmem:[%s3657_s3 + $0xe4] ss:$8 sps:$4 sm:$0xff]   ;;  %s2734_s26 = smov 30   ;;  %s2735_s27 = smov 124  }
  0x26   : > { %s2736_s28 = smov 28   ;;  %s2737_s29 = smov 120  }
  0x27   : > { %511 = vmatpush1.bf16.msra.mxu0 %v2478_v34  ;;  %v2556_v34 = vld [vmem:[%s3657_s3 + $0x54] ss:$8 sps:$4 sm:$0xff]   ;;  %s2738_s30 = smov 24   ;;  %s2739_s9 = smov 112  }
  0x28   : > { %512 = vmatprep.subr.bf16.mxu0 %v2482_v35  ;;  %918 = vmatpush1.bf16.msra.mxu1 %v2481_v36  ;;  %v2551_v35 = vld [vmem:[%s3657_s3 + $0x240] ss:$8 sps:$4 sm:$0xff]   ;;  %v2559_v36 = vld [vmem:[%s3657_s3 + $0x254] ss:$8 sps:$4 sm:$0xff]   ;;  %s2740_s10 = smov 16   ;;  %s2134_s13 = sshll.u32 %s3673_s25, 3 }
  0x29   : > { %919 = vmatprep.subr.bf16.mxu1 %v2485_v37  ;;  %v2554_v37 = vld [vmem:[%s3657_s3 + $0x50] ss:$8 sps:$4 sm:$0xff]   ;;  %s276_s17 = scalar_lea.vmem %s3661_s7, %s2134_s13 }
  0x2b   : > { %513 = vmatpush1.bf16.msra.mxu0 %v2484_v38  ;;  %v2557_v38 = vld [vmem:[%s3657_s3 + $0x250] ss:$8 sps:$4 sm:$0xff]  }
  0x2c   : > { %514 = vmatprep.subr.bf16.mxu0 %v2488_v39  ;;  %920 = vmatpush1.bf16.msra.mxu1 %v2487_v40  ;;  %v2562_v39 = vld [vmem:[%s3657_s3 + $0x64] ss:$8 sps:$4 sm:$0xff]   ;;  %v2560_v40 = vld [vmem:[%s3657_s3 + $0x60] ss:$8 sps:$4 sm:$0xff]  }
  0x2d   : > { %921 = vmatprep.subr.bf16.mxu1 %v2491_v41  ;;  %v2565_v41 = vld [vmem:[%s3657_s3 + $0x264] ss:$8 sps:$4 sm:$0xff]  }
  0x2f   : > { %515 = vmatpush1.bf16.msra.mxu0 %v2490_v42  ;;  %v2568_v42 = vld [vmem:[%s3657_s3 + $0x74] ss:$8 sps:$4 sm:$0xff]  }
  0x30   : > { %516 = vmatprep.subr.bf16.mxu0 %v2494_v43  ;;  %922 = vmatpush1.bf16.msra.mxu1 %v2493_v44  ;;  %v2563_v43 = vld [vmem:[%s3657_s3 + $0x260] ss:$8 sps:$4 sm:$0xff]   ;;  %v2571_v44 = vld [vmem:[%s3657_s3 + $0x274] ss:$8 sps:$4 sm:$0xff]  }
  0x31   : > { %923 = vmatprep.subr.bf16.mxu1 %v2497_v45  ;;  %v2566_v45 = vld [vmem:[%s3657_s3 + $0x70] ss:$8 sps:$4 sm:$0xff]  }
  0x33   : > { %517 = vmatpush1.bf16.msra.mxu0 %v2496_v47  ;;  %v2574_v47 = vld [vmem:[%s3657_s3 + $0x84] ss:$8 sps:$4 sm:$0xff]  }
  0x34   : > { %518 = vmatprep.subr.bf16.mxu0 %v2500_v49  ;;  %924 = vmatpush1.bf16.msra.mxu1 %v2499_v50  ;;  %v2577_v49 = vld [vmem:[%s3657_s3 + $0x284] ss:$8 sps:$4 sm:$0xff]   ;;  %v2572_v50 = vld [vmem:[%s3657_s3 + $0x80] ss:$8 sps:$4 sm:$0xff]  }
  0x35   : > { %925 = vmatprep.subr.bf16.mxu1 %v2503_v52  ;;  %v2580_v52 = vld [vmem:[%s3657_s3 + $0x94] ss:$8 sps:$4 sm:$0xff]  }
  0x37   : > { %519 = vmatpush1.bf16.msra.mxu0 %v2502_v53  ;;  %v2575_v53 = vld [vmem:[%s3657_s3 + $0x280] ss:$8 sps:$4 sm:$0xff]  }
  0x38   : > { %520 = vmatprep.subr.bf16.mxu0 %v2506_v54  ;;  %926 = vmatpush1.bf16.msra.mxu1 %v2505_v55  ;;  %v2583_v54 = vld [vmem:[%s3657_s3 + $0x294] ss:$8 sps:$4 sm:$0xff]   ;;  %v2578_v55 = vld [vmem:[%s3657_s3 + $0x90] ss:$8 sps:$4 sm:$0xff]  }
  0x39   : > { %927 = vmatprep.subr.bf16.mxu1 %v2509_v57  ;;  %v2586_v57 = vld [vmem:[%s3657_s3 + $0xa4] ss:$8 sps:$4 sm:$0xff]  }
  0x3b   : > { %521 = vmatpush1.bf16.msra.mxu0 %v2508_v58  ;;  %v2581_v58 = vld [vmem:[%s3657_s3 + $0x290] ss:$8 sps:$4 sm:$0xff]  }
  0x3c   : > { %522 = vmatprep.subr.bf16.mxu0 %v2512_v59  ;;  %928 = vmatpush1.bf16.msra.mxu1 %v2511_v60  ;;  %v2589_v59 = vld [vmem:[%s3657_s3 + $0x2a4] ss:$8 sps:$4 sm:$0xff]   ;;  %v2584_v60 = vld [vmem:[%s3657_s3 + $0xa0] ss:$8 sps:$4 sm:$0xff]  }
  0x3d   : > { %929 = vmatprep.subr.bf16.mxu1 %v2515_v61  ;;  %v2592_v61 = vld [vmem:[%s3657_s3 + $0xb4] ss:$8 sps:$4 sm:$0xff]  }
  0x3f   : > { %523 = vmatpush1.bf16.msra.mxu0 %v2514_v62  ;;  %v2587_v62 = vld [vmem:[%s3657_s3 + $0x2a0] ss:$8 sps:$4 sm:$0xff]  }
  0x40   : > { %524 = vmatprep.subr.bf16.mxu0 %v2518_v0  ;;  %930 = vmatpush1.bf16.msra.mxu1 %v2517_v3  ;;  %v2590_v0 = vld [vmem:[%s3657_s3 + $0xb0] ss:$8 sps:$4 sm:$0xff]  }
  0x41   : > { %931 = vmatprep.subr.bf16.mxu1 %v2521_v6  ;;  %v2593_v3 = vld [vmem:[%s3657_s3 + $0x2b0] ss:$8 sps:$4 sm:$0xff]   ;;  %v2604_v6 = vld [vmem:[%s3657_s3 + $0xd4] ss:$8 sps:$4 sm:$0xff]  }
  0x43   : > { %525 = vmatpush1.bf16.msra.mxu0 %v2520_v4  ;;  %v2601_v4 = vld [vmem:[%s3657_s3 + $0x2c4] ss:$8 sps:$4 sm:$0xff]  }
  0x44   : > { %1102 = vmatprep.subr.bf16.mxu0 %v2526_v10  ;;  %932 = vmatpush1.bf16.msra.mxu1 %v2523_v11  ;;  %v2607_v10 = vld [vmem:[%s3657_s3 + $0x2d4] ss:$8 sps:$4 sm:$0xff]   ;;  %v2602_v11 = vld [vmem:[%s3657_s3 + $0xd0] ss:$8 sps:$4 sm:$0xff]  }
  0x45   : > { %1336 = vmatprep.subr.bf16.mxu1 %v2529_v14  ;;  %v2613_v14 = vld [vmem:[%s3657_s3 + $0x2e4] ss:$8 sps:$4 sm:$0xff]  }
  0x46   : > { %527 = vmatmul.mubr.bf16.vlgmr.msra.gmra.mrb[0].mxu0 %v280_v13 }
  0x47   : > { %1103 = vmatpush1.bf16.msra.mxu0 %v2524_v15  ;;  %1134 = vmatprep.mubr.bf16.mxu0 %v666_v16  ;;  %v658_v15 = vrot.slane %v3007_v8, 7  ;;  %v2608_v16 = vld [vmem:[%s3657_s3 + $0xe0] ss:$8 sps:$4 sm:$0xff]  }
  0x48   : > { %934 = vmatmul.mubr.bf16.vlgmr.msra.gmra.mrb[0].mxu1 %v280_v13  ;;  %1104 = vmatprep.subr.bf16.mxu0 %v2532_v17  ;;  %v2605_v13 = vld [vmem:[%s3657_s3 + $0x2d0] ss:$8 sps:$4 sm:$0xff]   ;;  %v2616_v17 = vld [vmem:[%s3657_s3 + $0xf4] ss:$8 sps:$4 sm:$0xff]  }
  0x49   : > { %1337 = vmatpush1.bf16.msra.mxu1 %v2527_v18  ;;  %1368 = vmatprep.mubr.bf16.mxu1 %v675_v19  ;;  %v667_v18 = vrot.slane %v3007_v8, 1  ;;  %v2611_v19 = vld [vmem:[%s3657_s3 + $0x2e0] ss:$8 sps:$4 sm:$0xff]  }
  0x4a   : > { %1338 = vmatprep.subr.bf16.mxu1 %v2535_v20  ;;  %v2619_v20 = vld [vmem:[%s3657_s3 + $0x2f4] ss:$8 sps:$4 sm:$0xff]  }
  0x4b   : > { %1105 = vmatpush1.bf16.msra.mxu0 %v2530_v21  ;;  %v663_v21 = vmul.f32 %v2992_v2, %v658_v15  ;;  %v3213_v2 = vsub.s32 0, %v2966_v56 }
  0x4c   : > { %1106 = vmatprep.subr.bf16.mxu0 %v2538_v22  ;;  %v2614_v22 = vld [vmem:[%s3657_s3 + $0xf0] ss:$8 sps:$4 sm:$0xff]  }
  0x4d   : > { %1339 = vmatpush1.bf16.msra.mxu1 %v2533_v23  ;;  %v672_v23 = vmul.f32 %v3004_v7, %v667_v18  ;;  %v322_v7 = vsub.s32 4, %v2966_v56 }
  0x4e   : > { %1340 = vmatprep.subr.bf16.mxu1 %v2541_v24  ;;  %v2617_v24 = vld [vmem:[%s3657_s3 + $0x2f0] ss:$8 sps:$4 sm:$0xff]  }
  0x4f   : > { %1107 = vmatpush1.bf16.msra.mxu0 %v2536_v25  ;;  %v665_v25 = vpack.c.bf16 %v663_v21, %v663_v21 }
  0x50   : > { %1108 = vmatprep.subr.bf16.mxu0 %v2544_v26  ;;  %v674_v26 = vpack.c.bf16 %v672_v23, %v672_v23 }
  0x51   : > { %1341 = vmatpush1.bf16.msra.mxu1 %v2539_v27  ;;  %v3218_v27 = vld [vmem:[%s3656_s2] sm:$0xff] }
  0x52   : > { %1342 = vmatprep.subr.bf16.mxu1 %v2547_v28  ;;  %v319_v28 = vrot.slane %v3218_v27, %v3213_v2 }
  0x53   : > { %1109 = vmatpush1.bf16.msra.mxu0 %v2542_v29  ;;  %v323_v29 = vrot.slane %v3218_v27, %v322_v7 }
  0x54   : > { %1110 = vmatprep.subr.bf16.mxu0 %v2550_v30  ;;  %v329_v30 = vrot.slane %v319_v28, %v3213_v2 }
  0x55   : > { %1343 = vmatpush1.bf16.msra.mxu1 %v2545_v31  ;;  %v333_v31 = vrot.slane %v323_v29, %v3213_v2 }
  0x56   : > { %1344 = vmatprep.subr.bf16.mxu1 %v2553_v32 }
  0x57   : > { %1111 = vmatpush1.bf16.msra.mxu0 %v2548_v33 }
  0x58   : > { %1112 = vmatprep.subr.bf16.mxu0 %v2556_v34 }
  0x59   : > { %1345 = vmatpush1.bf16.msra.mxu1 %v2551_v35 }
  0x5a   : > { %1346 = vmatprep.subr.bf16.mxu1 %v2559_v36 }
  0x5b   : > { %1113 = vmatpush1.bf16.msra.mxu0 %v2554_v37 }
  0x5c   : > { %1114 = vmatprep.subr.bf16.mxu0 %v2562_v39 }
  0x5d   : > { %1347 = vmatpush1.bf16.msra.mxu1 %v2557_v38 }
  0x5e   : > { %1348 = vmatprep.subr.bf16.mxu1 %v2565_v41 }
  0x5f   : > { %1115 = vmatpush1.bf16.msra.mxu0 %v2560_v40 }
  0x60   : > { %1116 = vmatprep.subr.bf16.mxu0 %v2568_v42 }
  0x61   : > { %1349 = vmatpush1.bf16.msra.mxu1 %v2563_v43 }
  0x62   : > { %1350 = vmatprep.subr.bf16.mxu1 %v2571_v44 }
  0x63   : > { %1117 = vmatpush1.bf16.msra.mxu0 %v2566_v45 }
  0x64   : > { %1118 = vmatprep.subr.bf16.mxu0 %v2574_v47 }
  0x65   : > { %1351 = vmatpush1.bf16.msra.mxu1 %v2569_v48 }
  0x66   : > { %1352 = vmatprep.subr.bf16.mxu1 %v2577_v49 }
  0x67   : > { %1119 = vmatpush1.bf16.msra.mxu0 %v2572_v50 }
  0x68   : > { %1120 = vmatprep.subr.bf16.mxu0 %v2580_v52 }
  0x69   : > { %1353 = vmatpush1.bf16.msra.mxu1 %v2575_v53 }
  0x6a   : > { %1354 = vmatprep.subr.bf16.mxu1 %v2583_v54 }
  0x6b   : > { %1121 = vmatpush1.bf16.msra.mxu0 %v2578_v55 }
  0x6c   : > { %1122 = vmatprep.subr.bf16.mxu0 %v2586_v57 }
  0x6d   : > { %1355 = vmatpush1.bf16.msra.mxu1 %v2581_v58 }
  0x6e   : > { %1356 = vmatprep.subr.bf16.mxu1 %v2589_v59 }
  0x6f   : > { %1123 = vmatpush1.bf16.msra.mxu0 %v2584_v60 }
  0x70   : > { %1124 = vmatprep.subr.bf16.mxu0 %v2592_v61 }
  0x71   : > { %1357 = vmatpush1.bf16.msra.mxu1 %v2587_v62 }
  0x72   : > { %1358 = vmatprep.subr.bf16.mxu1 %v2595_v63 }
  0x73   : > { %1125 = vmatpush1.bf16.msra.mxu0 %v2590_v0 }
  0x74   : > { %1126 = vmatprep.subr.bf16.mxu0 %v2598_v1 }
  0x75   : > { %1359 = vmatpush1.bf16.msra.mxu1 %v2593_v3 }
  0x76   : > { %1360 = vmatprep.subr.bf16.mxu1 %v2601_v4 }
  0x77   : > { %1127 = vmatpush1.bf16.msra.mxu0 %v2596_v5 }
  0x78   : > { %1128 = vmatprep.subr.bf16.mxu0 %v2604_v6 }
  0x79   : > { %1361 = vmatpush1.bf16.msra.mxu1 %v2599_v9 }
  0x7a   : > { %1362 = vmatprep.subr.bf16.mxu1 %v2607_v10 }
  0x7b   : > { %1129 = vmatpush1.bf16.msra.mxu0 %v2602_v11 }
  0x7c   : > { %1130 = vmatprep.subr.bf16.mxu0 %v2610_v12 }
  0x7d   : > { %1363 = vmatpush1.bf16.msra.mxu1 %v2605_v13 }
  0x7e   : > { %1364 = vmatprep.subr.bf16.mxu1 %v2613_v14 }
  0x7f   : > { %1131 = vmatpush1.bf16.msra.mxu0 %v2608_v16 }
  0x80   : > { %1132 = vmatprep.subr.bf16.mxu0 %v2616_v17 }
  0x81   : > { %1365 = vmatpush1.bf16.msra.mxu1 %v2611_v19 }
  0x82   : > { %1366 = vmatprep.subr.bf16.mxu1 %v2619_v20 }
  0x83   : > { %1133 = vmatpush1.bf16.msra.mxu0 %v2614_v22 }
  0x85   : > { %1367 = vmatpush1.bf16.msra.mxu1 %v2617_v24 }
  0x86   : > { %1135 = vmatmul.mubr.bf16.vlgmr.msra.gmra.mrb[4].mxu0 %v665_v25 }
  0x88   : > { %1369 = vmatmul.mubr.bf16.vlgmr.msra.gmra.mrb[4].mxu1 %v674_v26 }
 0x119   : > { %v528_v32 = vpop.f32.mrb[0].mxu0 }
 0x11a   : > { %v529_v33 = vadd.f32 %v528_v32, %v329_v30  ;;  %v530_v34 = vpop.f32.mrb[1].mxu0 }
 0x11b   : > { %v531_v35 = vadd.f32 %v530_v34, %v333_v31  ;;  %v532_v36 = vpop.f32.mrb[2].mxu0  ;;  %v3226_v37 = vpop.f32.mrb[0].mxu1 }
 0x11c   : > { %v535_v38 = vrot.slane %v529_v33, 4  ;;  %v533_v39 = vpop.f32.mrb[3].mxu0  ;;  %v3228_v40 = vpop.f32.mrb[1].mxu1  ;;  %v2167_v48 = vmul.f32 -1.442695, %v529_v33 }
 0x11d   : > { %v541_v41 = vrot.slane %v531_v35, 4  ;;  %v939_v42 = vpop.f32.mrb[2].mxu1  ;;  %v2168_v52 = vmul.f32 -1.442695, %v531_v35 }
 0x11e   : > { %v536_v43 = vadd.f32 %v535_v38, %v529_v33  ;;  %v940_v44 = vpop.f32.mrb[3].mxu1  ;;  %2684 = vpow2.f32 %v2167_v48 }
 0x11f   : > { %v542_v45 = vadd.f32 %v541_v41, %v531_v35  ;;  %2686 = vpow2.f32 %v2168_v52  ;;  %v1381_v52 = vsub.s32 3, %v2966_v56 }
 0x120   : > { %v537_v47 = vrot.slane %v536_v43, 2 }
 0x121   : > { %v543_v49 = vrot.slane %v542_v45, 2 }
 0x122   : > { %v538_v50 = vadd.f32 %v537_v47, %v536_v43 }
 0x123   : > { %v544_v53 = vadd.f32 %v543_v49, %v542_v45 }
 0x124   : > { %v539_v54 = vrot.slane %v538_v50, 1 }
 0x125   : > { %v545_v55 = vrot.slane %v544_v53, 1 }
 0x126   : > { %v540_v57 = vadd.f32 %v539_v54, %v538_v50 }
 0x127   : > { %v546_v58 = vadd.f32 %v545_v55, %v544_v53 }
 0x128   : > { %v2169_v59 = vmul.f32 -0.125, %v540_v57  ;;  %v2685_v63 = vpop.eup %2684 }
 0x129   : > { %v2170_v60 = vmul.f32 -0.125, %v546_v58  ;;  %v2687_v0 = vpop.eup %2686  ;;  %v556_v1 = vadd.f32 1.0, %v2685_v63 }
 0x12a   : > { %v566_v61 = vmul.f32 1.442695, %v2169_v59  ;;  %v557_v3 = vadd.f32 1.0, %v2687_v0 }
 0x12b   : > { %v568_v62 = vmul.f32 1.442695, %v2170_v60  ;;  %v1382_v60 = vrot.slane %v3218_v27, %v1381_v52 }
 0x12c   : > { %2688 = vpow2.f32 %v566_v61 }
 0x12d   : > { %2690 = vpow2.f32 %v568_v62 }
 0x12e   : > { %2692 = vrcp.f32 %v556_v1  ;;  %v1392_v1 = vrot.slane %v1382_v60, %v1381_v52 }
 0x12f   : > { %2694 = vrcp.f32 %v557_v3 }
 0x136   : > { %v2689_v4 = vpop.eup %2688 }
 0x137   : > { %v570_v5 = vadd.f32 1.0, %v2689_v4  ;;  %v2691_v6 = vpop.eup %2690 }
 0x138   : > { %v571_v9 = vadd.f32 1.0, %v2691_v6  ;;  %v2693_v10 = vpop.eup %2692 }
 0x139   : > { %2696 = vrcp.f32 %v570_v5  ;;  %v2695_v11 = vpop.eup %2694  ;;  %v562_v12 = vmul.f32 %v2693_v10, %v3007_v8 }
 0x13a   : > { %2698 = vrcp.f32 %v571_v9  ;;  %v563_v15 = vmul.f32 %v2695_v11, %v2940_v46  ;;  %v3241_v11 = vsub.s32 1, %v2966_v56 }
 0x143   : > { %v2697_v13 = vpop.eup %2696 }
 0x144   : > { %v576_v14 = vmul.f32 %v2697_v13, %v562_v12  ;;  %v2699_v16 = vpop.eup %2698  ;;  %v638_v12 = vsub.s32 2, %v2966_v56  ;;  %v622_v13 = vsub.s32 5, %v2966_v56 }
 0x145   : > { %v577_v18 = vmul.f32 %v2699_v16, %v563_v15 }
 0x146   : > { %v578_v17 = vrot.slane %v576_v14, 4 }
 0x147   : > { %v584_v20 = vrot.slane %v577_v18, 4 }
 0x148   : > { %v579_v19 = vadd.f32 %v578_v17, %v576_v14  ;;  %v619_v17 = vrot.slane %v3218_v27, %v3241_v11 }
 0x149   : > { %v585_v22 = vadd.f32 %v584_v20, %v577_v18 }
 0x14a   : > { %v580_v21 = vrot.slane %v579_v19, 2 }
 0x14b   : > { %v586_v23 = vrot.slane %v585_v22, 2 }
 0x14c   : > { %v581_v24 = vadd.f32 %v580_v21, %v579_v19  ;;  %v623_v19 = vrot.slane %v3218_v27, %v622_v13 }
 0x14d   : > { %v587_v26 = vadd.f32 %v586_v23, %v585_v22  ;;  %v629_v23 = vrot.slane %v619_v17, %v3241_v11 }
 0x14e   : > { %v582_v25 = vrot.slane %v581_v24, 1 }
 0x14f   : > { %v588_v28 = vrot.slane %v587_v26, 1 }
 0x150   : > { %v583_v7 = vadd.f32 %v582_v25, %v581_v24 }
 0x151   : > { %v589_v30 = vadd.f32 %v588_v28, %v587_v26  ;;  %v633_v26 = vrot.slane %v623_v19, %v3241_v11 }
 0x152   : > { %v590_v29 = vmul.f32 0.125, %v583_v7 }
 0x153   : > { %v591_v31 = vmul.f32 0.125, %v589_v30 }
 0x154   : > { %v592_v8 = vsub.f32 %v576_v14, %v590_v29  ;;  %v642_v14 = vsub.s32 6, %v2966_v56 }
 0x155   : > { %v593_v33 = vsub.f32 %v577_v18, %v591_v31  ;;  %v639_v18 = vrot.slane %v3218_v27, %v638_v12 }
 0x156   : > { %v594_v32 = vmul.f32 %v592_v8, %v592_v8  ;;  %v643_v20 = vrot.slane %v3218_v27, %v642_v14 }
 0x157   : > { %v595_v34 = vmul.f32 %v593_v33, %v593_v33  ;;  %v649_v25 = vrot.slane %v639_v18, %v638_v12 }
 0x158   : > { %v596_v46 = vrot.slane %v594_v32, 4  ;;  %v653_v28 = vrot.slane %v643_v20, %v638_v12 }
 0x159   : > { %v1136_v35 = vpop.f32.mrb[4].mxu0  ;;  %v602_v41 = vrot.slane %v595_v34, 4 }
 0x15a   : > { %v1137_v36 = vadd.f32 %v1136_v35, %v3226_v37  ;;  %v1138_v38 = vpop.f32.mrb[5].mxu0  ;;  %v597_v39 = vadd.f32 %v596_v46, %v594_v32 }
 0x15b   : > { %v1139_v42 = vadd.f32 %v1138_v38, %v3228_v40  ;;  %v1370_v43 = vpop.f32.mrb[4].mxu1  ;;  %v1140_v44 = vpop.f32.mrb[6].mxu0  ;;  %v603_v50 = vadd.f32 %v602_v41, %v595_v34  ;;  %v1385_v40 = vsub.s32 7, %v2966_v56 }
 0x15c   : > { %v1377_v45 = vadd.f32 %v1370_v43, %v1137_v36  ;;  %v1372_v47 = vpop.f32.mrb[5].mxu1  ;;  %v1141_v48 = vpop.f32.mrb[7].mxu0  ;;  %v598_v49 = vrot.slane %v597_v39, 2 }
 0x15d   : > { %v1378_v53 = vadd.f32 %v1372_v47, %v1139_v42  ;;  %v1374_v54 = vpop.f32.mrb[6].mxu1  ;;  %v604_v58 = vrot.slane %v603_v50, 2  ;;  %v1386_v3 = vrot.slane %v3218_v27, %v1385_v40 }
 0x15e   : > { %v1375_v55 = vpop.f32.mrb[7].mxu1  ;;  %v599_v57 = vadd.f32 %v598_v49, %v597_v39  ;;  %v3238_v9 = vadd.f32 %v1392_v1, %v1377_v45 }
 0x15f   : > { %v605_v59 = vadd.f32 %v604_v58, %v603_v50  ;;  %v1396_v10 = vrot.slane %v1386_v3, %v1381_v52 }
 0x160   : > { %v600_v37 = vrot.slane %v599_v57, 1  ;;  %v1413_v15 = vrot.slane %v3238_v9, 4 }
 0x161   : > { %v606_v62 = vrot.slane %v605_v59, 1  ;;  %v3247_v16 = vadd.f32 %v1396_v10, %v1378_v53 }
 0x162   : > { %v601_v61 = vadd.f32 %v600_v37, %v599_v57  ;;  %v1414_v21 = vadd.f32 %v1413_v15, %v3238_v9 }
 0x163   : > { %v607_v0 = vadd.f32 %v606_v62, %v605_v59  ;;  %v1419_v22 = vrot.slane %v3247_v16, 4 }
 0x164   : > { %v608_v63 = vmul.f32 0.125, %v601_v61  ;;  %v1415_v29 = vrot.slane %v1414_v21, 2  ;;  %v3280_v61 = vand.u32 127, %v316_v51 }
 0x165   : > { %v609_v5 = vmul.f32 0.125, %v607_v0  ;;  %v1420_v30 = vadd.f32 %v1419_v22, %v3247_v16 }
 0x166   : > { %v610_v4 = vadd.f32 1e-05, %v608_v63  ;;  %v1416_v34 = vadd.f32 %v1415_v29, %v1414_v21  ;;  %v1432_v62 = vadd.s32 128, %v3280_v61  ;;  %v3284_v63 = vand.u32 31, %v3280_v61 }
 0x167   : > { %v611_v6 = vadd.f32 1e-05, %v609_v5  ;;  %v1421_v35 = vrot.slane %v1420_v30, 2  ;;  %vm1446_vm3 = vcmp.lt.s32.totalorder %v3280_v61, 31  ;;  %vm1439_vm4 = vcmp.lt.s32.totalorder %v3280_v61, 127 }
 0x168   : > { %2700 = vrsqrt.f32 %v610_v4  ;;  %v1417_v43 = vrot.slane %v1416_v34, 1  ;;  %v3286_v0 = vand.u32 31, %v1432_v62  ;;  %vm1449_vm5 = vcmp.lt.s32.totalorder %v3284_v63, 31 }
 0x169   : > { %2702 = vrsqrt.f32 %v611_v6  ;;  %v1422_v41 = vadd.f32 %v1421_v35, %v1420_v30  ;;  %vm1459_vm7 = vcmp.lt.s32.totalorder %v3280_v61, 126  ;;  %vm1466_vm8 = vcmp.lt.s32.totalorder %v3280_v61, 30 }
 0x16a   : > { %v1418_v48 = vadd.f32 %v1417_v43, %v1416_v34  ;;  %vm1450_vm6 = vcmp.lt.s32.totalorder %v3286_v0, 31  ;;  %vm1469_vm9 = vcmp.lt.s32.totalorder %v3284_v63, 30  ;;  %vm1470_vm10 = vcmp.lt.s32.totalorder %v3286_v0, 30 }
 0x16b   : > { %v1423_v50 = vrot.slane %v1422_v41, 1  ;;  %vm1479_vm11 = vcmp.lt.s32.totalorder %v3280_v61, 124  ;;  %vm1486_vm12 = vcmp.lt.s32.totalorder %v3280_v61, 28  ;;  %vm1489_vm13 = vcmp.lt.s32.totalorder %v3284_v63, 28 }
 0x16c   : > { %v1425_v55 = vmul.f32 0.125, %v1418_v48  ;;  %vm1490_vm14 = vcmp.lt.s32.totalorder %v3286_v0, 28  ;;  %vm3665_vm15 = vcmp.lt.s32.totalorder %v3280_v61, 120  ;;  %vm3662_vm0 = vcmp.lt.s32.totalorder %v3280_v61, 24 }
 0x16d   : > { %v1424_v58 = vadd.f32 %v1423_v50, %v1422_v41  ;;  %vm3663_vm1 = vcmp.lt.s32.totalorder %v3284_v63, 24 }
 0x16f   : > { %v1426_v60 = vmul.f32 0.125, %v1424_v58 }
 0x172   : > { %v2701_v56 = vpop.eup %2700 }
 0x173   : > { %v614_v24 = vmul.f32 %v2701_v56, %v592_v8  ;;  %v2703_v7 = vpop.eup %2702 }
 0x174   : > { %v615_v32 = vmul.f32 %v2703_v7, %v593_v33 }
 0x175   : > { %v634_v31 = vmul.f32 %v629_v23, %v614_v24 }
 0x176   : > { %v635_v27 = vmul.f32 %v633_v26, %v615_v32 }
 0x177   : > { %v3259_v46 = vadd.f32 %v649_v25, %v634_v31 }
 0x178   : > { %v3262_v38 = vadd.f32 %v653_v28, %v635_v27 }
 0x179   : > { %v1399_v36 = vrot.slane %v3259_v46, 4 }
 0x17a   : > { %v1405_v39 = vrot.slane %v3262_v38, 4 }
 0x17b   : > { %v1400_v8 = vadd.f32 %v1399_v36, %v3259_v46 }
 0x17c   : > { %v1406_v44 = vadd.f32 %v1405_v39, %v3262_v38 }
 0x17d   : > { %v1401_v42 = vrot.slane %v1400_v8, 2 }
 0x17e   : > { %v1407_v33 = vrot.slane %v1406_v44, 2 }
 0x17f   : > { %v1402_v45 = vadd.f32 %v1401_v42, %v1400_v8 }
 0x180   : > { %v1408_v49 = vadd.f32 %v1407_v33, %v1406_v44 }
 0x181   : > { %v1403_v47 = vrot.slane %v1402_v45, 1 }
 0x182   : > { %v1409_v53 = vrot.slane %v1408_v49, 1 }
 0x183   : > { %v1404_v52 = vadd.f32 %v1403_v47, %v1402_v45 }
 0x184   : > { %v1410_v57 = vadd.f32 %v1409_v53, %v1408_v49 }
 0x185   : > { %v1411_v54 = vmul.f32 0.125, %v1404_v52 }
 0x186   : > { %v1412_v59 = vmul.f32 0.125, %v1410_v57 }
 0x187   : > { %v3267_v37 = vsel %vm1427_vm2, %v1411_v54, %v1425_v55 }
 0x188   : > { %1442 = vrot.lane.b32.xlu1 %v3267_v37, %s2731_s21  ;;  %1435 = vrot.lane.b32.xlu0 %v3267_v37, %s2732_s22  ;;  %v3273_v40 = vsel %vm1427_vm2, %v1412_v59, %v1426_v60  ;;  %vm3664_vm2 = vcmp.lt.s32.totalorder %v3286_v0, 24 }
 0x18c   : > { %1444 = vrot.lane.b32.xlu1 %v3273_v40, %s2731_s21  ;;  %1437 = vrot.lane.b32.xlu0 %v3273_v40, %s2732_s22 }
 0x1fa   : > { %v1443_v1 = vpop.permute.xlu1 %1442  ;;  %v1436_v3 = vpop.permute.xlu0 %1435 }
 0x1fe   : > { %v1445_v4 = vpop.permute.xlu1 %1444  ;;  %v1438_v51 = vpop.permute.xlu0 %1437 }
 0x1ff   : > { %v1447_v5 = vsel %vm1446_vm3, %v1443_v1, %v1445_v4  ;;  %v1448_v6 = vsel %vm1446_vm3, %v1445_v4, %v1443_v1  ;;  %v1440_v10 = vsel %vm1439_vm4, %v1436_v3, %v1438_v51  ;;  %v1441_v12 = vsel %vm1439_vm4, %v1438_v51, %v1436_v3 }
 0x200   : > { %v1451_v13 = vsel %vm1449_vm5, %v1440_v10, %v1448_v6  ;;  %v1452_v14 = vsel %vm1450_vm6, %v1441_v12, %v1447_v5 }
 0x201   : > { %v1454_v15 = vmax.f32 %v3273_v40, %v1452_v14  ;;  %v1453_v17 = vmax.f32 %v3267_v37, %v1451_v13 }
 0x203   : > { %1457 = vrot.lane.b32.xlu1 %v1454_v15, %s2733_s23  ;;  %1455 = vrot.lane.b32.xlu0 %v1453_v17, %s2733_s23 }
 0x207   : > { %1464 = vrot.lane.b32.xlu1 %v1454_v15, %s2734_s26  ;;  %1462 = vrot.lane.b32.xlu0 %v1453_v17, %s2734_s26 }
 0x275   : > { %v1458_v18 = vpop.permute.xlu1 %1457  ;;  %v1456_v19 = vpop.permute.xlu0 %1455 }
 0x276   : > { %v1460_v22 = vsel %vm1459_vm7, %v1456_v19, %v1458_v18  ;;  %v1461_v23 = vsel %vm1459_vm7, %v1458_v18, %v1456_v19 }
 0x279   : > { %v1465_v20 = vpop.permute.xlu1 %1464  ;;  %v1463_v21 = vpop.permute.xlu0 %1462 }
 0x27a   : > { %v1467_v56 = vsel %vm1466_vm8, %v1463_v21, %v1465_v20  ;;  %v1468_v24 = vsel %vm1466_vm8, %v1465_v20, %v1463_v21 }
 0x27b   : > { %v1471_v25 = vsel %vm1469_vm9, %v1460_v22, %v1468_v24  ;;  %v1472_v26 = vsel %vm1470_vm10, %v1461_v23, %v1467_v56 }
 0x27c   : > { %v1473_v7 = vmax.f32 %v1453_v17, %v1471_v25  ;;  %v1474_v28 = vmax.f32 %v1454_v15, %v1472_v26 }
 0x27e   : > { %1475 = vrot.lane.b32.xlu0 %v1473_v7, %s2735_s27  ;;  %1477 = vrot.lane.b32.xlu1 %v1474_v28, %s2735_s27 }
 0x282   : > { %1482 = vrot.lane.b32.xlu0 %v1473_v7, %s2736_s28  ;;  %1484 = vrot.lane.b32.xlu1 %v1474_v28, %s2736_s28 }
 0x2f0   : > { %v1476_v29 = vpop.permute.xlu0 %1475  ;;  %v1478_v30 = vpop.permute.xlu1 %1477 }
 0x2f1   : > { %v1480_v27 = vsel %vm1479_vm11, %v1476_v29, %v1478_v30  ;;  %v1481_v34 = vsel %vm1479_vm11, %v1478_v30, %v1476_v29 }
 0x2f4   : > { %v1483_v31 = vpop.permute.xlu0 %1482  ;;  %v1485_v32 = vpop.permute.xlu1 %1484 }
 0x2f5   : > { %v1487_v35 = vsel %vm1486_vm12, %v1483_v31, %v1485_v32  ;;  %v1488_v36 = vsel %vm1486_vm12, %v1485_v32, %v1483_v31 }
 0x2f6   : > { %v1491_v8 = vsel %vm1489_vm13, %v1480_v27, %v1488_v36  ;;  %v1492_v39 = vsel %vm1490_vm14, %v1481_v34, %v1487_v35 }
 0x2f7   : > { %v1493_v41 = vmax.f32 %v1473_v7, %v1491_v8  ;;  %v1494_v42 = vmax.f32 %v1474_v28, %v1492_v39 }
 0x2f9   : > { %1495 = vrot.lane.b32.xlu0 %v1493_v41, %s2737_s29  ;;  %1497 = vrot.lane.b32.xlu1 %v1494_v42, %s2737_s29 }
 0x2fd   : > { %1502 = vrot.lane.b32.xlu0 %v1493_v41, %s2738_s30  ;;  %1504 = vrot.lane.b32.xlu1 %v1494_v42, %s2738_s30 }
 0x36b   : > { %v1496_v43 = vpop.permute.xlu0 %1495  ;;  %v1498_v44 = vpop.permute.xlu1 %1497 }
 0x36c   : > { %v1500_v47 = vsel %vm3665_vm15, %v1496_v43, %v1498_v44  ;;  %v1501_v48 = vsel %vm3665_vm15, %v1498_v44, %v1496_v43  ;;  %vm1530_vm15 = vcmp.lt.s32.totalorder %v3286_v0, 16 }
 0x36f   : > { %v1503_v45 = vpop.permute.xlu0 %1502  ;;  %v1505_v33 = vpop.permute.xlu1 %1504 }
 0x370   : > { %v1507_v49 = vsel %vm3662_vm0, %v1503_v45, %v1505_v33  ;;  %v1508_v50 = vsel %vm3662_vm0, %v1505_v33, %v1503_v45  ;;  %vm1519_vm0 = vcmp.lt.s32.totalorder %v3280_v61, 112 }
 0x371   : > { %v1511_v52 = vsel %vm3663_vm1, %v1500_v47, %v1508_v50  ;;  %v1512_v53 = vsel %vm3664_vm2, %v1501_v48, %v1507_v49  ;;  %vm1526_vm1 = vcmp.lt.s32.totalorder %v3280_v61, 16  ;;  %vm1529_vm2 = vcmp.lt.s32.totalorder %v3284_v63, 16 }
 0x372   : > { %v1513_v54 = vmax.f32 %v1493_v41, %v1511_v52  ;;  %v1514_v55 = vmax.f32 %v1494_v42, %v1512_v53 }
 0x374   : > { %1515 = vrot.lane.b32.xlu0 %v1513_v54, %s2739_s9  ;;  %1517 = vrot.lane.b32.xlu1 %v1514_v55, %s2739_s9 }
 0x378   : > { %1522 = vrot.lane.b32.xlu0 %v1513_v54, %s2740_s10  ;;  %1524 = vrot.lane.b32.xlu1 %v1514_v55, %s2740_s10 }
 0x3e6   : > { %v1516_v57 = vpop.permute.xlu0 %1515  ;;  %v1518_v58 = vpop.permute.xlu1 %1517 }
 0x3e7   : > { %v1520_v62 = vsel %vm1519_vm0, %v1516_v57, %v1518_v58  ;;  %v1521_v1 = vsel %vm1519_vm0, %v1518_v58, %v1516_v57  ;;  %v2622_v57 = vld [vmem:[%s3658_s4 + $0x4] ss:$8 sps:$4 sm:$0xff]   ;;  %v2625_v58 = vld [vmem:[%s3658_s4 + $0x14] ss:$8 sps:$4 sm:$0xff]  }
 0x3e8   : > { %1841 = vmatprep.subr.bf16.mxu0 %v2622_v57 }
 0x3ea   : > { %v1523_v59 = vpop.permute.xlu0 %1522  ;;  %v1525_v60 = vpop.permute.xlu1 %1524 }
 0x3eb   : > { %v1527_v3 = vsel %vm1526_vm1, %v1523_v59, %v1525_v60  ;;  %v1528_v4 = vsel %vm1526_vm1, %v1525_v60, %v1523_v59  ;;  %v2623_v59 = vld [vmem:[%s3658_s4 + $0x10] ss:$8 sps:$4 sm:$0xff]   ;;  %v2628_v60 = vld [vmem:[%s3658_s4 + $0x24] ss:$8 sps:$4 sm:$0xff]  }
 0x3ec   : > { %v1531_v51 = vsel %vm1529_vm2, %v1520_v62, %v1528_v4  ;;  %v1532_v5 = vsel %vm1530_vm15, %v1521_v1, %v1527_v3  ;;  %v2626_v62 = vld [vmem:[%s3658_s4 + $0x20] ss:$8 sps:$4 sm:$0xff]   ;;  %v2631_v1 = vld [vmem:[%s3658_s4 + $0x34] ss:$8 sps:$4 sm:$0xff]   ;;  %v2629_v3 = vld [vmem:[%s3658_s4 + $0x30] ss:$8 sps:$4 sm:$0xff]  }
 0x3ed   : > { %v1533_v6 = vmax.f32 %v1513_v54, %v1531_v51  ;;  %v1534_v10 = vmax.f32 %v1514_v55, %v1532_v5  ;;  %v2620_v55 = vld [vmem:[%s3658_s4] ss:$8 sps:$4 sm:$0xff]   ;;  %v2634_v4 = vld [vmem:[%s3658_s4 + $0x44] ss:$8 sps:$4 sm:$0xff]   ;;  %v2637_v5 = vld [vmem:[%s3658_s4 + $0x54] ss:$8 sps:$4 sm:$0xff]  }
 0x3ee   : > { %1842 = vmatpush1.bf16.msra.mxu0 %v2620_v55  ;;  %v2632_v51 = vld [vmem:[%s3658_s4 + $0x40] ss:$8 sps:$4 sm:$0xff]  }
 0x3ef   : > { %v1535_v12 = vsub.f32 %v3267_v37, %v1533_v6  ;;  %v1536_v13 = vsub.f32 %v3273_v40, %v1534_v10  ;;  %1843 = vmatprep.subr.bf16.mxu0 %v2625_v58  ;;  %v2635_v6 = vld [vmem:[%s3658_s4 + $0x50] ss:$8 sps:$4 sm:$0xff]   ;;  %v2640_v10 = vld [vmem:[%s3658_s4 + $0x64] ss:$8 sps:$4 sm:$0xff]  }
 0x3f1   : > { %v1537_v14 = vmul.f32 1.442695, %v1535_v12  ;;  %v1539_v15 = vmul.f32 1.442695, %v1536_v13  ;;  %v2638_v12 = vld [vmem:[%s3658_s4 + $0x60] ss:$8 sps:$4 sm:$0xff]  }
 0x3f2   : > { %1844 = vmatpush1.bf16.msra.mxu0 %v2623_v59  ;;  %v2643_v13 = vld [vmem:[%s3658_s4 + $0x74] ss:$8 sps:$4 sm:$0xff]  }
 0x3f3   : > { %2704 = vpow2.f32 %v1537_v14  ;;  %1845 = vmatprep.subr.bf16.mxu0 %v2628_v60  ;;  %v2641_v14 = vld [vmem:[%s3658_s4 + $0x70] ss:$8 sps:$4 sm:$0xff]  }
 0x3f4   : > { %2706 = vpow2.f32 %v1539_v15  ;;  %v2646_v15 = vld [vmem:[%s3658_s4 + $0x84] ss:$8 sps:$4 sm:$0xff]  }
 0x3f6   : > { %1846 = vmatpush1.bf16.msra.mxu0 %v2626_v62 }
 0x3f7   : > { %1847 = vmatprep.subr.bf16.mxu0 %v2631_v1 }
 0x3fa   : > { %1848 = vmatpush1.bf16.msra.mxu0 %v2629_v3 }
 0x3fb   : > { %1849 = vmatprep.subr.bf16.mxu0 %v2634_v4 }
 0x3fd   : > { %v3388_v17 = vpop.eup %2704 }
 0x3fe   : > { %v3390_v18 = vpop.eup %2706  ;;  %1541 = vrot.lane.b32.xlu0 %v3388_v17, %s2732_s22  ;;  %1850 = vmatpush1.bf16.msra.mxu0 %v2632_v51 }
 0x3ff   : > { %1543 = vrot.lane.b32.xlu1 %v3390_v18, %s2732_s22  ;;  %1851 = vmatprep.subr.bf16.mxu0 %v2637_v5 }
 0x402   : > { %1547 = vrot.lane.b32.xlu0 %v3388_v17, %s2731_s21  ;;  %1852 = vmatpush1.bf16.msra.mxu0 %v2635_v6 }
 0x403   : > { %1549 = vrot.lane.b32.xlu1 %v3390_v18, %s2731_s21  ;;  %1853 = vmatprep.subr.bf16.mxu0 %v2640_v10 }
 0x406   : > { %1854 = vmatpush1.bf16.msra.mxu0 %v2638_v12 }
 0x407   : > { %1855 = vmatprep.subr.bf16.mxu0 %v2643_v13  ;;  %v2674_v13 = vld [vmem:[%s3659_s5 + $0x58] sm:$0xff]  }
 0x40a   : > { %1856 = vmatpush1.bf16.msra.mxu0 %v2641_v14  ;;  %v2675_v14 = vld [vmem:[%s3659_s5 + $0x18] sm:$0xff]  }
 0x40b   : > { %1857 = vmatprep.subr.bf16.mxu0 %v2646_v15  ;;  %v2676_v15 = vld [vmem:[%s3659_s5 + $0x60] sm:$0xff]  }
 0x470   : > { %v1542_v37 = vpop.permute.xlu0 %1541 }
 0x471   : > { %v1544_v40 = vpop.permute.xlu1 %1543 }
 0x472   : > { %v1545_v21 = vsel %vm1439_vm4, %v1542_v37, %v1544_v40  ;;  %v1546_v22 = vsel %vm1439_vm4, %v1544_v40, %v1542_v37  ;;  %v2644_v37 = vld [vmem:[%s3658_s4 + $0x80] ss:$8 sps:$4 sm:$0xff]   ;;  %v2647_v40 = vld [vmem:[%s3658_s4 + $0x90] ss:$8 sps:$4 sm:$0xff]  }
 0x473   : > { %1858 = vmatpush1.bf16.msra.mxu0 %v2644_v37  ;;  %v2677_v37 = vld [vmem:[%s3659_s5 + $0x20] sm:$0xff]  }
 0x474   : > { %v1548_v19 = vpop.permute.xlu0 %1547 }
 0x475   : > { %v1550_v20 = vpop.permute.xlu1 %1549 }
 0x476   : > { %v1551_v23 = vsel %vm1446_vm3, %v1548_v19, %v1550_v20  ;;  %v1552_v56 = vsel %vm1446_vm3, %v1550_v20, %v1548_v19  ;;  %v2649_v19 = vld [vmem:[%s3658_s4 + $0x94] ss:$8 sps:$4 sm:$0xff]   ;;  %vm3666_vm3 = vcmp.lt.s32.totalorder %v3280_v61, 120 }
 0x477   : > { %v1553_v24 = vsel %vm1449_vm5, %v1545_v21, %v1552_v56  ;;  %v1554_v25 = vsel %vm1450_vm6, %v1546_v22, %v1551_v23  ;;  %1859 = vmatprep.subr.bf16.mxu0 %v2649_v19  ;;  %v2652_v22 = vld [vmem:[%s3658_s4 + $0xa4] ss:$8 sps:$4 sm:$0xff]   ;;  %v2650_v23 = vld [vmem:[%s3658_s4 + $0xa0] ss:$8 sps:$4 sm:$0xff]   ;;  %vm3667_vm4 = vmmov %vm3666_vm3  ;;  %vm3668_vm5 = vcmp.lt.s32.totalorder %v3280_v61, 24 }
 0x478   : > { %v1555_v26 = vadd.f32 %v3388_v17, %v1553_v24  ;;  %v1556_v7 = vadd.f32 %v3390_v18, %v1554_v25  ;;  %1860 = vmatpush1.bf16.msra.mxu0 %v2647_v40  ;;  %vm3669_vm6 = vmmov %vm3668_vm5  ;;  %v2678_v40 = vld [vmem:[%s3659_s5 + $0x68] sm:$0xff]  }
 0x479   : > { %1861 = vmatprep.subr.bf16.mxu0 %v2652_v22  ;;  %v2679_v19 = vld [vmem:[%s3659_s5 + $0x28] sm:$0xff]   ;;  %v2682_v22 = vld [vmem:[%s3659_s5 + $0x78] sm:$0xff]  }
 0x47a   : > { %1557 = vrot.lane.b32.xlu0 %v1555_v26, %s2733_s23  ;;  %1559 = vrot.lane.b32.xlu1 %v1556_v7, %s2733_s23 }
 0x47c   : > { %1862 = vmatpush1.bf16.msra.mxu0 %v2650_v23  ;;  %v2683_v23 = vld [vmem:[%s3659_s5 + $0x38] sm:$0xff]  }
 0x47e   : > { %1563 = vrot.lane.b32.xlu0 %v1555_v26, %s2734_s26  ;;  %1565 = vrot.lane.b32.xlu1 %v1556_v7, %s2734_s26 }
 0x4ec   : > { %v1558_v28 = vpop.permute.xlu0 %1557  ;;  %v1560_v29 = vpop.permute.xlu1 %1559 }
 0x4ed   : > { %v1561_v32 = vsel %vm1459_vm7, %v1558_v28, %v1560_v29  ;;  %v1562_v27 = vsel %vm1459_vm7, %v1560_v29, %v1558_v28  ;;  %v2653_v29 = vld [vmem:[%s3658_s4 + $0xb0] ss:$8 sps:$4 sm:$0xff]   ;;  %vm3670_vm7 = vcmp.lt.s32.totalorder %v3284_v63, 24 }
 0x4f0   : > { %v1564_v30 = vpop.permute.xlu0 %1563  ;;  %v1566_v31 = vpop.permute.xlu1 %1565 }
 0x4f1   : > { %v1567_v34 = vsel %vm1466_vm8, %v1564_v30, %v1566_v31  ;;  %v1568_v35 = vsel %vm1466_vm8, %v1566_v31, %v1564_v30  ;;  %v2655_v30 = vld [vmem:[%s3658_s4 + $0xb4] ss:$8 sps:$4 sm:$0xff]   ;;  %vm3671_vm8 = vcmp.lt.s32.totalorder %v3286_v0, 24 }
 0x4f2   : > { %v1569_v36 = vsel %vm1469_vm9, %v1561_v32, %v1568_v35  ;;  %v1570_v8 = vsel %vm1470_vm10, %v1562_v27, %v1567_v34  ;;  %v2658_v27 = vld [vmem:[%s3658_s4 + $0xc4] ss:$8 sps:$4 sm:$0xff]   ;;  %1863 = vmatprep.subr.bf16.mxu0 %v2655_v30 }
 0x4f3   : > { %v1571_v39 = vadd.f32 %v1569_v36, %v1555_v26  ;;  %v1572_v41 = vadd.f32 %v1570_v8, %v1556_v7  ;;  %1864 = vmatpush1.bf16.msra.mxu0 %v2653_v29  ;;  %v2656_v36 = vld [vmem:[%s3658_s4 + $0xc0] ss:$8 sps:$4 sm:$0xff]   ;;  %v2661_v8 = vld [vmem:[%s3658_s4 + $0xd4] ss:$8 sps:$4 sm:$0xff]  }
 0x4f4   : > { %1865 = vmatprep.subr.bf16.mxu0 %v2658_v27 }
 0x4f5   : > { %1573 = vrot.lane.b32.xlu0 %v1571_v39, %s2735_s27  ;;  %1575 = vrot.lane.b32.xlu1 %v1572_v41, %s2735_s27 }
 0x4f7   : > { %1866 = vmatpush1.bf16.msra.mxu0 %v2656_v36 }
 0x4f8   : > { %1867 = vmatprep.subr.bf16.mxu0 %v2661_v8  ;;  %v2721_v8 = vld [vmem:[%s2928_s8 + $0x8] sm:$0xff] }
 0x4f9   : > { %1579 = vrot.lane.b32.xlu0 %v1571_v39, %s2736_s28  ;;  %1581 = vrot.lane.b32.xlu1 %v1572_v41, %s2736_s28 }
 0x567   : > { %v1574_v42 = vpop.permute.xlu0 %1573  ;;  %v1576_v43 = vpop.permute.xlu1 %1575 }
 0x568   : > { %v1577_v33 = vsel %vm1479_vm11, %v1574_v42, %v1576_v43  ;;  %v1578_v47 = vsel %vm1479_vm11, %v1576_v43, %v1574_v42  ;;  %v2662_v42 = vld [vmem:[%s3658_s4 + $0xe0] ss:$8 sps:$4 sm:$0xff]   ;;  %v2667_v43 = vld [vmem:[%s3658_s4 + $0xf4] ss:$8 sps:$4 sm:$0xff]  }
 0x56b   : > { %v1580_v44 = vpop.permute.xlu0 %1579  ;;  %v1582_v45 = vpop.permute.xlu1 %1581 }
 0x56c   : > { %v1583_v48 = vsel %vm1486_vm12, %v1580_v44, %v1582_v45  ;;  %v1584_v49 = vsel %vm1486_vm12, %v1582_v45, %v1580_v44  ;;  %v2665_v44 = vld [vmem:[%s3658_s4 + $0xf0] ss:$8 sps:$4 sm:$0xff]  }
 0x56d   : > { %v1585_v50 = vsel %vm1489_vm13, %v1577_v33, %v1584_v49  ;;  %v1586_v52 = vsel %vm1490_vm14, %v1578_v47, %v1583_v48 }
 0x56e   : > { %v3446_v53 = vadd.f32 %v1585_v50, %v1571_v39  ;;  %v3448_v54 = vadd.f32 %v1586_v52, %v1572_v41  ;;  %v2659_v39 = vld [vmem:[%s3658_s4 + $0xd0] ss:$8 sps:$4 sm:$0xff]   ;;  %v2664_v41 = vld [vmem:[%s3658_s4 + $0xe4] ss:$8 sps:$4 sm:$0xff]  }
 0x56f   : > { %1868 = vmatpush1.bf16.msra.mxu0 %v2659_v39 }
 0x570   : > { %1589 = vrot.lane.b32.xlu0 %v3446_v53, %s2737_s29  ;;  %1591 = vrot.lane.b32.xlu1 %v3448_v54, %s2737_s29 }
 0x571   : > { %1869 = vmatprep.subr.bf16.mxu0 %v2664_v41 }
 0x573   : > { %1870 = vmatpush1.bf16.msra.mxu0 %v2662_v42 }
 0x574   : > { %1595 = vrot.lane.b32.xlu0 %v3446_v53, %s2738_s30  ;;  %1597 = vrot.lane.b32.xlu1 %v3448_v54, %s2738_s30 }
 0x575   : > { %1871 = vmatprep.subr.bf16.mxu0 %v2667_v43 }
 0x577   : > { %1872 = vmatpush1.bf16.msra.mxu0 %v2665_v44  ;;  %v2367_v44 = vld [vmem:[%s3660_s6] ss:$0 sm:$0xff] }
 0x5e2   : > { %v1590_v20 = vpop.permute.xlu0 %1589  ;;  %v1592_v21 = vpop.permute.xlu1 %1591 }
 0x5e3   : > { %v1593_v25 = vsel %vm3666_vm3, %v1590_v20, %v1592_v21  ;;  %v1594_v26 = vsel %vm3667_vm4, %v1592_v21, %v1590_v20  ;;  %v2680_v20 = vld [vmem:[%s3659_s5 + $0x70] sm:$0xff]  }
 0x5e4   : > { %v2681_v21 = vld [vmem:[%s3659_s5 + $0x30] sm:$0xff]  }
 0x5e6   : > { %v1596_v56 = vpop.permute.xlu0 %1595  ;;  %v1598_v24 = vpop.permute.xlu1 %1597 }
 0x5e7   : > { %v1599_v7 = vsel %vm3668_vm5, %v1596_v56, %v1598_v24  ;;  %v1600_v28 = vsel %vm3669_vm6, %v1598_v24, %v1596_v56 }
 0x5e8   : > { %v1601_v31 = vsel %vm3670_vm7, %v1593_v25, %v1600_v28  ;;  %v1602_v32 = vsel %vm3671_vm8, %v1594_v26, %v1599_v7 }
 0x5e9   : > { %v1603_v34 = vadd.f32 %v1601_v31, %v3446_v53  ;;  %v1604_v35 = vadd.f32 %v1602_v32, %v3448_v54 }
 0x5eb   : > { %1605 = vrot.lane.b32.xlu0 %v1603_v34, %s2739_s9  ;;  %1607 = vrot.lane.b32.xlu1 %v1604_v35, %s2739_s9 }
 0x5ef   : > { %1611 = vrot.lane.b32.xlu0 %v1603_v34, %s2740_s10  ;;  %1613 = vrot.lane.b32.xlu1 %v1604_v35, %s2740_s10 }
 0x65d   : > { %v1606_v45 = vpop.permute.xlu0 %1605  ;;  %v1608_v33 = vpop.permute.xlu1 %1607 }
 0x65e   : > { %v1609_v49 = vsel %vm1519_vm0, %v1606_v45, %v1608_v33  ;;  %v1610_v50 = vsel %vm1519_vm0, %v1608_v33, %v1606_v45 }
 0x661   : > { %v1612_v47 = vpop.permute.xlu0 %1611  ;;  %v1614_v48 = vpop.permute.xlu1 %1613 }
 0x662   : > { %v1615_v52 = vsel %vm1526_vm1, %v1612_v47, %v1614_v48  ;;  %v1616_v53 = vsel %vm1526_vm1, %v1614_v48, %v1612_v47 }
 0x663   : > { %v1617_v54 = vsel %vm1529_vm2, %v1609_v49, %v1616_v53  ;;  %v1618_v55 = vsel %vm1530_vm15, %v1610_v50, %v1615_v52 }
 0x664   : > { %v1619_v57 = vadd.f32 %v1617_v54, %v1603_v34  ;;  %v1620_v58 = vadd.f32 %v1618_v55, %v1604_v35  ;;  %v2720_v35 = vld [vmem:[%s2928_s8] sm:$0xff] }
 0x666   : > { %2708 = vrcp.f32 %v1619_v57 }
 0x667   : > { %2710 = vrcp.f32 %v1620_v58 }
 0x670   : > { %v2709_v59 = vpop.eup %2708 }
 0x671   : > { %v2711_v60 = vpop.eup %2710  ;;  %v1622_v62 = vmul.f32 %v2709_v59, %v3388_v17 }
 0x672   : > { %v1624_v1 = vmul.f32 %v2711_v60, %v3390_v18 }
 0x673   : > { %v1628_v3 = vrot.slane %v1622_v62, %v3213_v2  ;;  %v1638_v61 = vrot.slane %v1622_v62, %v3241_v11 }
 0x674   : > { %v1632_v63 = vrot.slane %v1624_v1, %v3213_v2  ;;  %v1642_v4 = vrot.slane %v1624_v1, %v3241_v11  ;;  %v2668_v2 = vld [vmem:[%s3659_s5 + $0x40] sm:$0xff]   ;;  %v2670_v11 = vld [vmem:[%s3659_s5 + $0x48] sm:$0xff]  }
 0x675   : > { %v1633_v0 = vmul.f32 %v1628_v3, %v3238_v9  ;;  %v1643_v51 = vmul.f32 %v1638_v61, %v3259_v46  ;;  %v2669_v9 = vld [vmem:[%s3659_s5] sm:$0xff]   ;;  %2387 = vmatprep.subr.bf16.mxu1 %v2668_v2  ;;  %v2672_v46 = vld [vmem:[%s3659_s5 + $0x50] sm:$0xff]  }
 0x676   : > { %v1634_v5 = vmul.f32 %v1632_v63, %v3247_v16  ;;  %v1644_v6 = vmul.f32 %v1642_v4, %v3262_v38  ;;  %2388 = vmatpush3.bf16.msra.mxu1 %v2669_v9  ;;  %v2671_v16 = vld [vmem:[%s3659_s5 + $0x8] sm:$0xff]   ;;  %v2673_v38 = vld [vmem:[%s3659_s5 + $0x10] sm:$0xff]  }
 0x677   : > { %v1645_v10 = vadd.f32 %v1643_v51, %v1633_v0  ;;  %2389 = vmatprep.subr.bf16.mxu1 %v2670_v11 }
 0x678   : > { %v1646_v17 = vadd.f32 %v1644_v6, %v1634_v5 }
 0x679   : > { %v1647_v12 = vpack.c.bf16 %v1645_v10, %v1645_v10 }
 0x67a   : > { %v1648_v18 = vpack.c.bf16 %v1646_v17, %v1646_v17  ;;  %2390 = vmatpush3.bf16.msra.mxu1 %v2671_v16 }
 0x67b   : > { %2391 = vmatprep.subr.bf16.mxu1 %v2672_v46 }
 0x67c   : > { %1873 = vmatprep.mubr.bf16.mxu0 %v1648_v18 }
 0x67d   : > { %1874 = vmatmul.mubr.bf16.vlgmr.msra.gmra.mrb[8].mxu0 %v1647_v12 }
 0x67e   : > { %2392 = vmatpush3.bf16.msra.mxu1 %v2673_v38 }
 0x67f   : > { %2393 = vmatprep.subr.bf16.mxu1 %v2674_v13 }
 0x682   : > { %2394 = vmatpush3.bf16.msra.mxu1 %v2675_v14 }
 0x683   : > { %2395 = vmatprep.subr.bf16.mxu1 %v2676_v15 }
 0x686   : > { %2396 = vmatpush3.bf16.msra.mxu1 %v2677_v37 }
 0x687   : > { %2397 = vmatprep.subr.bf16.mxu1 %v2678_v40 }
 0x68a   : > { %2398 = vmatpush3.bf16.msra.mxu1 %v2679_v19 }
 0x68b   : > { %2399 = vmatprep.subr.bf16.mxu1 %v2680_v20 }
 0x68e   : > { %2400 = vmatpush3.bf16.msra.mxu1 %v2681_v21 }
 0x68f   : > { %2401 = vmatprep.subr.bf16.mxu1 %v2682_v22 }
 0x692   : > { %2402 = vmatpush3.bf16.msra.mxu1 %v2683_v23 }
 0x750   : > { %v1875_v56 = vpop.f32.mrb[8].mxu0 }
 0x751   : > { %v2365_v24 = vmul.f32 -1.442695, %v1875_v56  ;;  %v1877_v25 = vpop.f32.mrb[9].mxu0 }
 0x752   : > { %v2366_v26 = vmul.f32 -1.442695, %v1877_v25  ;;  %v1879_v7 = vpop.f32.mrb[10].mxu0 }
 0x753   : > { %2712 = vpow2.f32 %v2365_v24  ;;  %v1880_v28 = vpop.f32.mrb[11].mxu0 }
 0x754   : > { %2714 = vpow2.f32 %v2366_v26 }
 0x75d   : > { %v2713_v29 = vpop.eup %2712 }
 0x75e   : > { %v2715_v30 = vpop.eup %2714  ;;  %v1888_v31 = vadd.f32 1.0, %v2713_v29 }
 0x75f   : > { %v1889_v32 = vadd.f32 1.0, %v2715_v30 }
 0x760   : > { %2716 = vrcp.f32 %v1888_v31 }
 0x761   : > { %2718 = vrcp.f32 %v1889_v32 }
 0x76a   : > { %v2717_v27 = vpop.eup %2716 }
 0x76b   : > { %v2719_v34 = vpop.eup %2718  ;;  %v1894_v36 = vmul.f32 %v2720_v35, %v2717_v27 }
 0x76c   : > { %v1895_v39 = vmul.f32 %v2721_v8, %v2719_v34 }
 0x76d   : > { %v1896_v42 = vpack.c.bf16 %v1894_v36, %v1894_v36 }
 0x76e   : > { %v1897_v41 = vpack.c.bf16 %v1895_v39, %v1895_v39 }
 0x770   : > { %2065 = vmatprep.mubr.bf16.mxu1 %v1897_v41 }
 0x771   : > { %2066 = vmatmul.mubr.bf16.vlgmr.msra.gmra.mrb[8].mxu1 %v1896_v42 }
 0x844   : > { %v2403_v43 = vpop.f32.mrb[8].mxu1 }
 0x845   : > { %v2404_v45 = vpop.f32.mrb[9].mxu1 }
 0x846   : > { %v2405_v33 = vadd.f32 %v2404_v45, %v2403_v43  ;;  %v2406_v47 = vpop.f32.mrb[10].mxu1 }
 0x847   : > { %v2407_v48 = vpop.f32.mrb[11].mxu1 }
 0x848   : > { %v2068_v49 = vadd.f32 %v2405_v33, %v2367_v44 }
 0x84a   : > { %2073 = vst [vmem:[%s276_s17] sm:$0xff] %v2068_v49 }
 0x84b PF: > { %s17_s24 = sadd.s32 1, %s2728_s24  }
 0x84c   : > { %p14_p4 = scmp.ge.s32.totalorder %s17_s24, 4  }
 0x84e   :  { %16 = sbr.rel (!%p14_p4) target bundleno = 1 (0x1), region = 80 }

</bundles_post_ra>
